<compile_context>
chip_gen: v6e
topology: v6e:2x2x1
jax: 0.10.0
libtpu: 0.0.40
codegen_flags: <defaults>
</compile_context>

<pallas_src>
import math
import functools

import jax
import jax.numpy as jnp
from jax.experimental import pallas as pl
from jax.experimental.pallas import tpu as pltpu  # noqa: F401  (TPU backend assumed)

# ---- small BERT-like config ------------------------------------------------
VOCAB = 100
HIDDEN = 32
NUM_LAYERS = 2
NUM_HEADS = 4
INTERMEDIATE = 64
MAX_POS = 16
TYPE_VOCAB = 2
NUM_LABELS = 3
LN_EPS = 1e-12
LANE = 128
LABELS_PAD = ((NUM_LABELS + LANE - 1) // LANE) * LANE   # lane-dense output width


# ---- in-kernel math helpers ------------------------------------------------
def _gelu_tanh(x):
    # tanh-approx GELU: tanh goes to the EUP, unlike the mul/add-heavy erf polynomial.
    # TODO(synk): differs from the exact erf-based BERT GELU by <~1e-3 in the tails.
    c = 0.7978845608028654  # sqrt(2/pi)
    return 0.5 * x * (1.0 + jnp.tanh(c * (x + 0.044715 * (x * x * x))))


def _layer_norm(x, gamma, beta):
    mu = jnp.mean(x, axis=-1, keepdims=True)
    var = jnp.mean((x - mu) * (x - mu), axis=-1, keepdims=True)
    return (x - mu) * jax.lax.rsqrt(var + LN_EPS) * gamma + beta


def _softmax_lastdim(s):
    s = s - jnp.max(s, axis=-1, keepdims=True)
    p = jnp.exp(s)                                                    # EUP
    return p * pl.reciprocal(jnp.sum(p, axis=-1, keepdims=True), approx=True)


# ---- fused kernel ----------------------------------------------------------
def _bert_fused_kernel(x_ref, bias_ref, emb_g_ref, emb_b_ref,
                       wqkv_ref, bqkv_ref,
                       wo_ref, bo_ref, ln1g_ref, ln1b_ref,
                       wi_ref, bi_ref, wf_ref, bf_ref, ln2g_ref, ln2b_ref,
                       clsw_ref, clsb_ref, out_ref, *, num_layers, num_heads):
    # x_ref: (N, H) summed embeddings, N = B*S;  bias_ref: (N, N) additive attention bias.
    x = _layer_norm(x_ref[...], emb_g_ref[...], emb_b_ref[...])      # (N, H) f32
    bias = bias_ref[...]                                             # (N, N) f32
    N, H = x.shape
    hd = H // num_heads

    for l in range(num_layers):                                      # unrolled (L=2)
        xb = x.astype(jnp.bfloat16)
        # single fused Q|K|V projection; Q weights/bias pre-scaled by 1/sqrt(hd)
        qkv = (jnp.dot(xb, wqkv_ref[l], preferred_element_type=jnp.float32)
               + bqkv_ref[l])                                         # (N, 3H) f32
        q = qkv[:, 0 * H:1 * H]
        k = qkv[:, 1 * H:2 * H]
        v = qkv[:, 2 * H:3 * H]

        attn = jnp.zeros((N, H), jnp.float32)
        for h in range(num_heads):                                   # unrolled (4)
            sl = slice(h * hd, (h + 1) * hd)
            qh = q[:, sl].astype(jnp.bfloat16)
            kh = k[:, sl].astype(jnp.bfloat16)
            vh = v[:, sl].astype(jnp.bfloat16)
            s = jnp.dot(qh, kh.T, preferred_element_type=jnp.float32) + bias
            p = _softmax_lastdim(s)
            ctx = jnp.dot(p.astype(jnp.bfloat16), vh,
                          preferred_element_type=jnp.float32)        # (N, hd)
            # output projection folded into the head loop -> no lane-axis concat
            attn = attn + jnp.dot(ctx.astype(jnp.bfloat16),
                                  wo_ref[l * num_heads + h],
                                  preferred_element_type=jnp.float32)

        x = _layer_norm(x + attn + bo_ref[l], ln1g_ref[l], ln1b_ref[l])

        x1b = x.astype(jnp.bfloat16)
        inter = _gelu_tanh(
            jnp.dot(x1b, wi_ref[l], preferred_element_type=jnp.float32) + bi_ref[l])
        ffn = jnp.dot(inter.astype(jnp.bfloat16), wf_ref[l],
                      preferred_element_type=jnp.float32) + bf_ref[l]
        x = _layer_norm(x + ffn, ln2g_ref[l], ln2b_ref[l])

    # classifier, written to a lane-dense (N, 128) slab (zero-padded weight columns)
    out_ref[...] = (jnp.dot(x.astype(jnp.bfloat16), clsw_ref[...],
                            preferred_element_type=jnp.float32) + clsb_ref[...])


# ---- wrapper ---------------------------------------------------------------
def bert_token_classification_forward(params, input_ids, token_type_ids, attention_mask):
    B, S = input_ids.shape
    N = B * S
    nh, hd = NUM_HEADS, HIDDEN // NUM_HEADS
    scale = 1.0 / math.sqrt(hd)

    # Embedding gathers are glue (table lookups); done in plain JAX.
    pos_ids = jnp.arange(S)[None, :]
    emb = (params["word_emb"][input_ids]
           + params["pos_emb"][pos_ids]
           + params["type_emb"][token_type_ids]).astype(jnp.float32)
    x = emb.reshape(N, HIDDEN)

    # Block-diagonal additive attention bias over flattened tokens:
    # key j visible to query i iff same batch element and attention_mask[j] == 1,
    # otherwise -10000 (BERT-style additive mask).
    mask_f = attention_mask.astype(jnp.float32)                      # (B, S)
    key_valid = mask_f.reshape(1, 1, B, S)
    same_batch = jnp.eye(B, dtype=jnp.float32).reshape(B, 1, B, 1)
    visible = jnp.broadcast_to(same_batch * key_valid, (B, S, B, S)).reshape(N, N)
    bias = (1.0 - visible) * -10000.0

    bf16 = lambda a: a.astype(jnp.bfloat16)

    # Fused QKV weights, with the 1/sqrt(head_dim) attention scale folded into Q.
    wqkv = bf16(jnp.concatenate(
        [params["wq"] * scale, params["wk"], params["wv"]], axis=-1))  # (L, H, 3H)
    bqkv = jnp.concatenate(
        [params["bq"] * scale, params["bk"], params["bv"]], axis=-1)   # (L, 1, 3H)

    # Wo pre-split per head: rows [h*hd:(h+1)*hd] of the (H, H) matrix.
    wo_h = bf16(params["wo"].reshape(NUM_LAYERS * nh, hd, HIDDEN))

    # Pad classifier to a full 128-lane output slab.
    pad = LABELS_PAD - NUM_LABELS
    cls_w = bf16(jnp.pad(params["cls_w"], ((0, 0), (0, pad))))
    cls_b = jnp.pad(params["cls_b"], ((0, 0), (0, pad)))

    kernel = functools.partial(_bert_fused_kernel,
                               num_layers=NUM_LAYERS, num_heads=NUM_HEADS)
    # Entire problem fits in a single VMEM-resident block (well under v7x's 64 MiB),
    # so no grid / BlockSpec tiling is needed at this size.
    logits_pad = pl.pallas_call(
        kernel,
        out_shape=jax.ShapeDtypeStruct((N, LABELS_PAD), jnp.float32),
    )(x, bias, params["emb_ln_g"], params["emb_ln_b"],
      wqkv, bqkv, wo_h, params["bo"],
      params["ln1_g"], params["ln1_b"],
      bf16(params["wi"]), params["bi"], bf16(params["wf"]), params["bf"],
      params["ln2_g"], params["ln2_b"],
      cls_w, cls_b)

    return logits_pad[:, :NUM_LABELS].reshape(B, S, NUM_LABELS)
    # TODO(synk): CrossEntropy loss branch (labels is not None) not implemented.


# ---- deterministic parameter init (per-layer weights stacked on a leading axis) ----
def init_params(key):
    kit = iter(jax.random.split(key, 16))
    nrm = lambda shape: 0.02 * jax.random.normal(next(kit), shape, jnp.float32)
    L, H, I = NUM_LAYERS, HIDDEN, INTERMEDIATE
    z = lambda shape: jnp.zeros(shape, jnp.float32)
    o = lambda shape: jnp.ones(shape, jnp.float32)
    return {
        "word_emb": nrm((VOCAB, H)),
        "pos_emb": nrm((MAX_POS, H)),
        "type_emb": nrm((TYPE_VOCAB, H)),
        "emb_ln_g": o((1, H)), "emb_ln_b": z((1, H)),
        "wq": nrm((L, H, H)), "bq": z((L, 1, H)),
        "wk": nrm((L, H, H)), "bk": z((L, 1, H)),
        "wv": nrm((L, H, H)), "bv": z((L, 1, H)),
        "wo": nrm((L, H, H)), "bo": z((L, 1, H)),
        "ln1_g": o((L, 1, H)), "ln1_b": z((L, 1, H)),
        "wi": nrm((L, H, I)), "bi": z((L, 1, I)),
        "wf": nrm((L, I, H)), "bf": z((L, 1, H)),
        "ln2_g": o((L, 1, H)), "ln2_b": z((L, 1, H)),
        "cls_w": nrm((H, NUM_LABELS)), "cls_b": z((1, NUM_LABELS)),
    }


if __name__ == "__main__":
    key = jax.random.PRNGKey(0)
    k_params, k_ids, k_types = jax.random.split(key, 3)
    params = init_params(k_params)

    B, S = 2, 8
    input_ids = jax.random.randint(k_ids, (B, S), 0, VOCAB, dtype=jnp.int32)
    token_type_ids = jax.random.randint(k_types, (B, S), 0, TYPE_VOCAB, dtype=jnp.int32)
    attention_mask = jnp.array([[1, 1, 1, 1, 1, 1, 1, 1],
                                [1, 1, 1, 1, 1, 1, 0, 0]], dtype=jnp.int32)

    logits = bert_token_classification_forward(params, input_ids, token_type_ids,
                                               attention_mask)
    logits = jax.block_until_ready(logits)
    assert logits.shape == (B, S, NUM_LABELS)
    assert bool(jnp.all(jnp.isfinite(logits)))
    print("KERNEL_OK")
</pallas_src>

<mosaic_0001>
module attributes {stable_mosaic.version = 11 : i64} {
  func.func @_bert_fused_kernel(%arg0: memref<16x32xf32, #tpu.memory_space<vmem>>, %arg1: memref<16x16xf32, #tpu.memory_space<vmem>>, %arg2: memref<1x32xf32, #tpu.memory_space<vmem>>, %arg3: memref<1x32xf32, #tpu.memory_space<vmem>>, %arg4: memref<2x32x96xbf16, #tpu.memory_space<vmem>>, %arg5: memref<2x1x96xf32, #tpu.memory_space<vmem>>, %arg6: memref<8x8x32xbf16, #tpu.memory_space<vmem>>, %arg7: memref<2x1x32xf32, #tpu.memory_space<vmem>>, %arg8: memref<2x1x32xf32, #tpu.memory_space<vmem>>, %arg9: memref<2x1x32xf32, #tpu.memory_space<vmem>>, %arg10: memref<2x32x64xbf16, #tpu.memory_space<vmem>>, %arg11: memref<2x1x64xf32, #tpu.memory_space<vmem>>, %arg12: memref<2x64x32xbf16, #tpu.memory_space<vmem>>, %arg13: memref<2x1x32xf32, #tpu.memory_space<vmem>>, %arg14: memref<2x1x32xf32, #tpu.memory_space<vmem>>, %arg15: memref<2x1x32xf32, #tpu.memory_space<vmem>>, %arg16: memref<32x128xbf16, #tpu.memory_space<vmem>>, %arg17: memref<1x128xf32, #tpu.memory_space<vmem>>, %arg18: memref<16x128xf32, #tpu.memory_space<vmem>>) attributes {dimension_semantics = [], scalar_prefetch = 0 : i64, scratch_operands = 0 : i64, tpu.core_type = #tpu.core_type<tc>} {
    %c0 = arith.constant 0 : index
    %c0_0 = arith.constant 0 : index
    %0 = vector.load %arg0[%c0, %c0_0] : memref<16x32xf32, #tpu.memory_space<vmem>>, vector<16x32xf32>
    %c0_1 = arith.constant 0 : index
    %c0_2 = arith.constant 0 : index
    %1 = vector.load %arg2[%c0_1, %c0_2] : memref<1x32xf32, #tpu.memory_space<vmem>>, vector<1x32xf32>
    %c0_3 = arith.constant 0 : index
    %c0_4 = arith.constant 0 : index
    %2 = vector.load %arg3[%c0_3, %c0_4] : memref<1x32xf32, #tpu.memory_space<vmem>>, vector<1x32xf32>
    %cst = arith.constant dense<0.000000e+00> : vector<16xf32>
    %3 = vector.multi_reduction <add>, %0, %cst [1] : vector<16x32xf32> to vector<16xf32>
    %4 = vector.shape_cast %3 : vector<16xf32> to vector<16x1xf32>
    %cst_5 = arith.constant 3.200000e+01 : f32
    %5 = vector.broadcast %cst_5 : f32 to vector<16x1xf32>
    %6 = arith.divf %4, %5 : vector<16x1xf32>
    %7 = vector.broadcast %6 : vector<16x1xf32> to vector<16x32xf32>
    %8 = arith.subf %0, %7 : vector<16x32xf32>
    %9 = vector.broadcast %6 : vector<16x1xf32> to vector<16x32xf32>
    %10 = arith.subf %0, %9 : vector<16x32xf32>
    %11 = arith.mulf %8, %10 : vector<16x32xf32>
    %cst_6 = arith.constant dense<0.000000e+00> : vector<16xf32>
    %12 = vector.multi_reduction <add>, %11, %cst_6 [1] : vector<16x32xf32> to vector<16xf32>
    %13 = vector.shape_cast %12 : vector<16xf32> to vector<16x1xf32>
    %cst_7 = arith.constant 3.200000e+01 : f32
    %14 = vector.broadcast %cst_7 : f32 to vector<16x1xf32>
    %15 = arith.divf %13, %14 : vector<16x1xf32>
    %16 = vector.broadcast %6 : vector<16x1xf32> to vector<16x32xf32>
    %17 = arith.subf %0, %16 : vector<16x32xf32>
    %cst_8 = arith.constant 9.99999996E-13 : f32
    %18 = vector.broadcast %cst_8 : f32 to vector<16x1xf32>
    %19 = arith.addf %15, %18 : vector<16x1xf32>
    %20 = math.rsqrt %19 : vector<16x1xf32>
    %21 = vector.broadcast %20 : vector<16x1xf32> to vector<16x32xf32>
    %22 = arith.mulf %17, %21 : vector<16x32xf32>
    %23 = vector.broadcast %1 : vector<1x32xf32> to vector<16x32xf32>
    %24 = arith.mulf %22, %23 : vector<16x32xf32>
    %25 = vector.broadcast %2 : vector<1x32xf32> to vector<16x32xf32>
    %26 = arith.addf %24, %25 : vector<16x32xf32>
    %c0_9 = arith.constant 0 : index
    %c0_10 = arith.constant 0 : index
    %27 = vector.load %arg1[%c0_9, %c0_10] : memref<16x16xf32, #tpu.memory_space<vmem>>, vector<16x16xf32>
    %28 = arith.truncf %26 : vector<16x32xf32> to vector<16x32xbf16>
    %c0_11 = arith.constant 0 : index
    %c0_12 = arith.constant 0 : index
    %c0_13 = arith.constant 0 : index
    %29 = vector.load %arg4[%c0_11, %c0_12, %c0_13] : memref<2x32x96xbf16, #tpu.memory_space<vmem>>, vector<1x32x96xbf16>
    %30 = vector.shape_cast %29 : vector<1x32x96xbf16> to vector<32x96xbf16>
    %cst_14 = arith.constant dense<0.000000e+00> : vector<16x96xf32>
    %31 = tpu.matmul %28, %30, %cst_14 {dimension_numbers = #tpu.dot_dimension_numbers<[1], [0], [0], [1], [0, 0, 1, 1], [], []>} : vector<16x32xbf16>, vector<32x96xbf16>, vector<16x96xf32> -> vector<16x96xf32>
    %c0_15 = arith.constant 0 : index
    %c0_16 = arith.constant 0 : index
    %c0_17 = arith.constant 0 : index
    %32 = vector.load %arg5[%c0_15, %c0_16, %c0_17] : memref<2x1x96xf32, #tpu.memory_space<vmem>>, vector<1x1x96xf32>
    %33 = vector.shape_cast %32 : vector<1x1x96xf32> to vector<1x96xf32>
    %34 = vector.broadcast %33 : vector<1x96xf32> to vector<16x96xf32>
    %35 = arith.addf %31, %34 : vector<16x96xf32>
    %36 = vector.extract_strided_slice %35 {offsets = [0, 0], sizes = [16, 32], strides = [1, 1]} : vector<16x96xf32> to vector<16x32xf32>
    %37 = vector.extract_strided_slice %35 {offsets = [0, 32], sizes = [16, 32], strides = [1, 1]} : vector<16x96xf32> to vector<16x32xf32>
    %38 = vector.extract_strided_slice %35 {offsets = [0, 64], sizes = [16, 32], strides = [1, 1]} : vector<16x96xf32> to vector<16x32xf32>
    %cst_18 = arith.constant 0.000000e+00 : f32
    %39 = vector.broadcast %cst_18 : f32 to vector<16x32xf32>
    %40 = vector.extract_strided_slice %36 {offsets = [0, 0], sizes = [16, 8], strides = [1, 1]} : vector<16x32xf32> to vector<16x8xf32>
    %41 = arith.truncf %40 : vector<16x8xf32> to vector<16x8xbf16>
    %42 = vector.extract_strided_slice %37 {offsets = [0, 0], sizes = [16, 8], strides = [1, 1]} : vector<16x32xf32> to vector<16x8xf32>
    %43 = arith.truncf %42 : vector<16x8xf32> to vector<16x8xbf16>
    %44 = vector.extract_strided_slice %38 {offsets = [0, 0], sizes = [16, 8], strides = [1, 1]} : vector<16x32xf32> to vector<16x8xf32>
    %45 = arith.truncf %44 : vector<16x8xf32> to vector<16x8xbf16>
    %46 = tpu.transpose %43, [1, 0] : vector<16x8xbf16> -> vector<8x16xbf16>
    %cst_19 = arith.constant dense<0.000000e+00> : vector<16x16xf32>
    %47 = tpu.matmul %41, %46, %cst_19 {dimension_numbers = #tpu.dot_dimension_numbers<[1], [0], [0], [1], [0, 0, 1, 1], [], []>} : vector<16x8xbf16>, vector<8x16xbf16>, vector<16x16xf32> -> vector<16x16xf32>
    %48 = arith.addf %47, %27 : vector<16x16xf32>
    %cst_20 = arith.constant dense<0xFF800000> : vector<16xf32>
    %49 = vector.multi_reduction <maximumf>, %48, %cst_20 [1] : vector<16x16xf32> to vector<16xf32>
    %50 = vector.shape_cast %49 : vector<16xf32> to vector<16x1xf32>
    %51 = vector.broadcast %50 : vector<16x1xf32> to vector<16x16xf32>
    %52 = arith.subf %48, %51 : vector<16x16xf32>
    %53 = math.exp %52 : vector<16x16xf32>
    %cst_21 = arith.constant dense<0.000000e+00> : vector<16xf32>
    %54 = vector.multi_reduction <add>, %53, %cst_21 [1] : vector<16x16xf32> to vector<16xf32>
    %55 = vector.shape_cast %54 : vector<16xf32> to vector<16x1xf32>
    %56 = tpu.reciprocal %55 {approx = true} : vector<16x1xf32> -> vector<16x1xf32>
    %57 = vector.broadcast %56 : vector<16x1xf32> to vector<16x16xf32>
    %58 = arith.mulf %53, %57 : vector<16x16xf32>
    %59 = arith.truncf %58 : vector<16x16xf32> to vector<16x16xbf16>
    %cst_22 = arith.constant dense<0.000000e+00> : vector<16x8xf32>
    %60 = tpu.matmul %59, %45, %cst_22 {dimension_numbers = #tpu.dot_dimension_numbers<[1], [0], [0], [1], [0, 0, 1, 1], [], []>} : vector<16x16xbf16>, vector<16x8xbf16>, vector<16x8xf32> -> vector<16x8xf32>
    %61 = arith.truncf %60 : vector<16x8xf32> to vector<16x8xbf16>
    %c0_23 = arith.constant 0 : index
    %c0_24 = arith.constant 0 : index
    %c0_25 = arith.constant 0 : index
    %62 = vector.load %arg6[%c0_23, %c0_24, %c0_25] : memref<8x8x32xbf16, #tpu.memory_space<vmem>>, vector<1x8x32xbf16>
    %63 = vector.shape_cast %62 : vector<1x8x32xbf16> to vector<8x32xbf16>
    %cst_26 = arith.constant dense<0.000000e+00> : vector<16x32xf32>
    %64 = tpu.matmul %61, %63, %cst_26 {dimension_numbers = #tpu.dot_dimension_numbers<[1], [0], [0], [1], [0, 0, 1, 1], [], []>} : vector<16x8xbf16>, vector<8x32xbf16>, vector<16x32xf32> -> vector<16x32xf32>
    %65 = arith.addf %39, %64 : vector<16x32xf32>
    %66 = vector.extract_strided_slice %36 {offsets = [0, 8], sizes = [16, 8], strides = [1, 1]} : vector<16x32xf32> to vector<16x8xf32>
    %67 = arith.truncf %66 : vector<16x8xf32> to vector<16x8xbf16>
    %68 = vector.extract_strided_slice %37 {offsets = [0, 8], sizes = [16, 8], strides = [1, 1]} : vector<16x32xf32> to vector<16x8xf32>
    %69 = arith.truncf %68 : vector<16x8xf32> to vector<16x8xbf16>
    %70 = vector.extract_strided_slice %38 {offsets = [0, 8], sizes = [16, 8], strides = [1, 1]} : vector<16x32xf32> to vector<16x8xf32>
    %71 = arith.truncf %70 : vector<16x8xf32> to vector<16x8xbf16>
    %72 = tpu.transpose %69, [1, 0] : vector<16x8xbf16> -> vector<8x16xbf16>
    %cst_27 = arith.constant dense<0.000000e+00> : vector<16x16xf32>
    %73 = tpu.matmul %67, %72, %cst_27 {dimension_numbers = #tpu.dot_dimension_numbers<[1], [0], [0], [1], [0, 0, 1, 1], [], []>} : vector<16x8xbf16>, vector<8x16xbf16>, vector<16x16xf32> -> vector<16x16xf32>
    %74 = arith.addf %73, %27 : vector<16x16xf32>
    %cst_28 = arith.constant dense<0xFF800000> : vector<16xf32>
    %75 = vector.multi_reduction <maximumf>, %74, %cst_28 [1] : vector<16x16xf32> to vector<16xf32>
    %76 = vector.shape_cast %75 : vector<16xf32> to vector<16x1xf32>
    %77 = vector.broadcast %76 : vector<16x1xf32> to vector<16x16xf32>
    %78 = arith.subf %74, %77 : vector<16x16xf32>
    %79 = math.exp %78 : vector<16x16xf32>
    %cst_29 = arith.constant dense<0.000000e+00> : vector<16xf32>
    %80 = vector.multi_reduction <add>, %79, %cst_29 [1] : vector<16x16xf32> to vector<16xf32>
    %81 = vector.shape_cast %80 : vector<16xf32> to vector<16x1xf32>
    %82 = tpu.reciprocal %81 {approx = true} : vector<16x1xf32> -> vector<16x1xf32>
    %83 = vector.broadcast %82 : vector<16x1xf32> to vector<16x16xf32>
    %84 = arith.mulf %79, %83 : vector<16x16xf32>
    %85 = arith.truncf %84 : vector<16x16xf32> to vector<16x16xbf16>
    %cst_30 = arith.constant dense<0.000000e+00> : vector<16x8xf32>
    %86 = tpu.matmul %85, %71, %cst_30 {dimension_numbers = #tpu.dot_dimension_numbers<[1], [0], [0], [1], [0, 0, 1, 1], [], []>} : vector<16x16xbf16>, vector<16x8xbf16>, vector<16x8xf32> -> vector<16x8xf32>
    %87 = arith.truncf %86 : vector<16x8xf32> to vector<16x8xbf16>
    %c1 = arith.constant 1 : index
    %c0_31 = arith.constant 0 : index
    %c0_32 = arith.constant 0 : index
    %88 = vector.load %arg6[%c1, %c0_31, %c0_32] : memref<8x8x32xbf16, #tpu.memory_space<vmem>>, vector<1x8x32xbf16>
    %89 = vector.shape_cast %88 : vector<1x8x32xbf16> to vector<8x32xbf16>
    %cst_33 = arith.constant dense<0.000000e+00> : vector<16x32xf32>
    %90 = tpu.matmul %87, %89, %cst_33 {dimension_numbers = #tpu.dot_dimension_numbers<[1], [0], [0], [1], [0, 0, 1, 1], [], []>} : vector<16x8xbf16>, vector<8x32xbf16>, vector<16x32xf32> -> vector<16x32xf32>
    %91 = arith.addf %65, %90 : vector<16x32xf32>
    %92 = vector.extract_strided_slice %36 {offsets = [0, 16], sizes = [16, 8], strides = [1, 1]} : vector<16x32xf32> to vector<16x8xf32>
    %93 = arith.truncf %92 : vector<16x8xf32> to vector<16x8xbf16>
    %94 = vector.extract_strided_slice %37 {offsets = [0, 16], sizes = [16, 8], strides = [1, 1]} : vector<16x32xf32> to vector<16x8xf32>
    %95 = arith.truncf %94 : vector<16x8xf32> to vector<16x8xbf16>
    %96 = vector.extract_strided_slice %38 {offsets = [0, 16], sizes = [16, 8], strides = [1, 1]} : vector<16x32xf32> to vector<16x8xf32>
    %97 = arith.truncf %96 : vector<16x8xf32> to vector<16x8xbf16>
    %98 = tpu.transpose %95, [1, 0] : vector<16x8xbf16> -> vector<8x16xbf16>
    %cst_34 = arith.constant dense<0.000000e+00> : vector<16x16xf32>
    %99 = tpu.matmul %93, %98, %cst_34 {dimension_numbers = #tpu.dot_dimension_numbers<[1], [0], [0], [1], [0, 0, 1, 1], [], []>} : vector<16x8xbf16>, vector<8x16xbf16>, vector<16x16xf32> -> vector<16x16xf32>
    %100 = arith.addf %99, %27 : vector<16x16xf32>
    %cst_35 = arith.constant dense<0xFF800000> : vector<16xf32>
    %101 = vector.multi_reduction <maximumf>, %100, %cst_35 [1] : vector<16x16xf32> to vector<16xf32>
    %102 = vector.shape_cast %101 : vector<16xf32> to vector<16x1xf32>
    %103 = vector.broadcast %102 : vector<16x1xf32> to vector<16x16xf32>
    %104 = arith.subf %100, %103 : vector<16x16xf32>
    %105 = math.exp %104 : vector<16x16xf32>
    %cst_36 = arith.constant dense<0.000000e+00> : vector<16xf32>
    %106 = vector.multi_reduction <add>, %105, %cst_36 [1] : vector<16x16xf32> to vector<16xf32>
    %107 = vector.shape_cast %106 : vector<16xf32> to vector<16x1xf32>
    %108 = tpu.reciprocal %107 {approx = true} : vector<16x1xf32> -> vector<16x1xf32>
    %109 = vector.broadcast %108 : vector<16x1xf32> to vector<16x16xf32>
    %110 = arith.mulf %105, %109 : vector<16x16xf32>
    %111 = arith.truncf %110 : vector<16x16xf32> to vector<16x16xbf16>
    %cst_37 = arith.constant dense<0.000000e+00> : vector<16x8xf32>
    %112 = tpu.matmul %111, %97, %cst_37 {dimension_numbers = #tpu.dot_dimension_numbers<[1], [0], [0], [1], [0, 0, 1, 1], [], []>} : vector<16x16xbf16>, vector<16x8xbf16>, vector<16x8xf32> -> vector<16x8xf32>
    %113 = arith.truncf %112 : vector<16x8xf32> to vector<16x8xbf16>
    %c2 = arith.constant 2 : index
    %c0_38 = arith.constant 0 : index
    %c0_39 = arith.constant 0 : index
    %114 = vector.load %arg6[%c2, %c0_38, %c0_39] : memref<8x8x32xbf16, #tpu.memory_space<vmem>>, vector<1x8x32xbf16>
    %115 = vector.shape_cast %114 : vector<1x8x32xbf16> to vector<8x32xbf16>
    %cst_40 = arith.constant dense<0.000000e+00> : vector<16x32xf32>
    %116 = tpu.matmul %113, %115, %cst_40 {dimension_numbers = #tpu.dot_dimension_numbers<[1], [0], [0], [1], [0, 0, 1, 1], [], []>} : vector<16x8xbf16>, vector<8x32xbf16>, vector<16x32xf32> -> vector<16x32xf32>
    %117 = arith.addf %91, %116 : vector<16x32xf32>
    %118 = vector.extract_strided_slice %36 {offsets = [0, 24], sizes = [16, 8], strides = [1, 1]} : vector<16x32xf32> to vector<16x8xf32>
    %119 = arith.truncf %118 : vector<16x8xf32> to vector<16x8xbf16>
    %120 = vector.extract_strided_slice %37 {offsets = [0, 24], sizes = [16, 8], strides = [1, 1]} : vector<16x32xf32> to vector<16x8xf32>
    %121 = arith.truncf %120 : vector<16x8xf32> to vector<16x8xbf16>
    %122 = vector.extract_strided_slice %38 {offsets = [0, 24], sizes = [16, 8], strides = [1, 1]} : vector<16x32xf32> to vector<16x8xf32>
    %123 = arith.truncf %122 : vector<16x8xf32> to vector<16x8xbf16>
    %124 = tpu.transpose %121, [1, 0] : vector<16x8xbf16> -> vector<8x16xbf16>
    %cst_41 = arith.constant dense<0.000000e+00> : vector<16x16xf32>
    %125 = tpu.matmul %119, %124, %cst_41 {dimension_numbers = #tpu.dot_dimension_numbers<[1], [0], [0], [1], [0, 0, 1, 1], [], []>} : vector<16x8xbf16>, vector<8x16xbf16>, vector<16x16xf32> -> vector<16x16xf32>
    %126 = arith.addf %125, %27 : vector<16x16xf32>
    %cst_42 = arith.constant dense<0xFF800000> : vector<16xf32>
    %127 = vector.multi_reduction <maximumf>, %126, %cst_42 [1] : vector<16x16xf32> to vector<16xf32>
    %128 = vector.shape_cast %127 : vector<16xf32> to vector<16x1xf32>
    %129 = vector.broadcast %128 : vector<16x1xf32> to vector<16x16xf32>
    %130 = arith.subf %126, %129 : vector<16x16xf32>
    %131 = math.exp %130 : vector<16x16xf32>
    %cst_43 = arith.constant dense<0.000000e+00> : vector<16xf32>
    %132 = vector.multi_reduction <add>, %131, %cst_43 [1] : vector<16x16xf32> to vector<16xf32>
    %133 = vector.shape_cast %132 : vector<16xf32> to vector<16x1xf32>
    %134 = tpu.reciprocal %133 {approx = true} : vector<16x1xf32> -> vector<16x1xf32>
    %135 = vector.broadcast %134 : vector<16x1xf32> to vector<16x16xf32>
    %136 = arith.mulf %131, %135 : vector<16x16xf32>
    %137 = arith.truncf %136 : vector<16x16xf32> to vector<16x16xbf16>
    %cst_44 = arith.constant dense<0.000000e+00> : vector<16x8xf32>
    %138 = tpu.matmul %137, %123, %cst_44 {dimension_numbers = #tpu.dot_dimension_numbers<[1], [0], [0], [1], [0, 0, 1, 1], [], []>} : vector<16x16xbf16>, vector<16x8xbf16>, vector<16x8xf32> -> vector<16x8xf32>
    %139 = arith.truncf %138 : vector<16x8xf32> to vector<16x8xbf16>
    %c3 = arith.constant 3 : index
    %c0_45 = arith.constant 0 : index
    %c0_46 = arith.constant 0 : index
    %140 = vector.load %arg6[%c3, %c0_45, %c0_46] : memref<8x8x32xbf16, #tpu.memory_space<vmem>>, vector<1x8x32xbf16>
    %141 = vector.shape_cast %140 : vector<1x8x32xbf16> to vector<8x32xbf16>
    %cst_47 = arith.constant dense<0.000000e+00> : vector<16x32xf32>
    %142 = tpu.matmul %139, %141, %cst_47 {dimension_numbers = #tpu.dot_dimension_numbers<[1], [0], [0], [1], [0, 0, 1, 1], [], []>} : vector<16x8xbf16>, vector<8x32xbf16>, vector<16x32xf32> -> vector<16x32xf32>
    %143 = arith.addf %117, %142 : vector<16x32xf32>
    %144 = arith.addf %26, %143 : vector<16x32xf32>
    %c0_48 = arith.constant 0 : index
    %c0_49 = arith.constant 0 : index
    %c0_50 = arith.constant 0 : index
    %145 = vector.load %arg7[%c0_48, %c0_49, %c0_50] : memref<2x1x32xf32, #tpu.memory_space<vmem>>, vector<1x1x32xf32>
    %146 = vector.shape_cast %145 : vector<1x1x32xf32> to vector<1x32xf32>
    %147 = vector.broadcast %146 : vector<1x32xf32> to vector<16x32xf32>
    %148 = arith.addf %144, %147 : vector<16x32xf32>
    %c0_51 = arith.constant 0 : index
    %c0_52 = arith.constant 0 : index
    %c0_53 = arith.constant 0 : index
    %149 = vector.load %arg8[%c0_51, %c0_52, %c0_53] : memref<2x1x32xf32, #tpu.memory_space<vmem>>, vector<1x1x32xf32>
    %150 = vector.shape_cast %149 : vector<1x1x32xf32> to vector<1x32xf32>
    %c0_54 = arith.constant 0 : index
    %c0_55 = arith.constant 0 : index
    %c0_56 = arith.constant 0 : index
    %151 = vector.load %arg9[%c0_54, %c0_55, %c0_56] : memref<2x1x32xf32, #tpu.memory_space<vmem>>, vector<1x1x32xf32>
    %152 = vector.shape_cast %151 : vector<1x1x32xf32> to vector<1x32xf32>
    %cst_57 = arith.constant dense<0.000000e+00> : vector<16xf32>
    %153 = vector.multi_reduction <add>, %148, %cst_57 [1] : vector<16x32xf32> to vector<16xf32>
    %154 = vector.shape_cast %153 : vector<16xf32> to vector<16x1xf32>
    %cst_58 = arith.constant 3.200000e+01 : f32
    %155 = vector.broadcast %cst_58 : f32 to vector<16x1xf32>
    %156 = arith.divf %154, %155 : vector<16x1xf32>
    %157 = vector.broadcast %156 : vector<16x1xf32> to vector<16x32xf32>
    %158 = arith.subf %148, %157 : vector<16x32xf32>
    %159 = vector.broadcast %156 : vector<16x1xf32> to vector<16x32xf32>
    %160 = arith.subf %148, %159 : vector<16x32xf32>
    %161 = arith.mulf %158, %160 : vector<16x32xf32>
    %cst_59 = arith.constant dense<0.000000e+00> : vector<16xf32>
    %162 = vector.multi_reduction <add>, %161, %cst_59 [1] : vector<16x32xf32> to vector<16xf32>
    %163 = vector.shape_cast %162 : vector<16xf32> to vector<16x1xf32>
    %cst_60 = arith.constant 3.200000e+01 : f32
    %164 = vector.broadcast %cst_60 : f32 to vector<16x1xf32>
    %165 = arith.divf %163, %164 : vector<16x1xf32>
    %166 = vector.broadcast %156 : vector<16x1xf32> to vector<16x32xf32>
    %167 = arith.subf %148, %166 : vector<16x32xf32>
    %cst_61 = arith.constant 9.99999996E-13 : f32
    %168 = vector.broadcast %cst_61 : f32 to vector<16x1xf32>
    %169 = arith.addf %165, %168 : vector<16x1xf32>
    %170 = math.rsqrt %169 : vector<16x1xf32>
    %171 = vector.broadcast %170 : vector<16x1xf32> to vector<16x32xf32>
    %172 = arith.mulf %167, %171 : vector<16x32xf32>
    %173 = vector.broadcast %150 : vector<1x32xf32> to vector<16x32xf32>
    %174 = arith.mulf %172, %173 : vector<16x32xf32>
    %175 = vector.broadcast %152 : vector<1x32xf32> to vector<16x32xf32>
    %176 = arith.addf %174, %175 : vector<16x32xf32>
    %177 = arith.truncf %176 : vector<16x32xf32> to vector<16x32xbf16>
    %c0_62 = arith.constant 0 : index
    %c0_63 = arith.constant 0 : index
    %c0_64 = arith.constant 0 : index
    %178 = vector.load %arg10[%c0_62, %c0_63, %c0_64] : memref<2x32x64xbf16, #tpu.memory_space<vmem>>, vector<1x32x64xbf16>
    %179 = vector.shape_cast %178 : vector<1x32x64xbf16> to vector<32x64xbf16>
    %cst_65 = arith.constant dense<0.000000e+00> : vector<16x64xf32>
    %180 = tpu.matmul %177, %179, %cst_65 {dimension_numbers = #tpu.dot_dimension_numbers<[1], [0], [0], [1], [0, 0, 1, 1], [], []>} : vector<16x32xbf16>, vector<32x64xbf16>, vector<16x64xf32> -> vector<16x64xf32>
    %c0_66 = arith.constant 0 : index
    %c0_67 = arith.constant 0 : index
    %c0_68 = arith.constant 0 : index
    %181 = vector.load %arg11[%c0_66, %c0_67, %c0_68] : memref<2x1x64xf32, #tpu.memory_space<vmem>>, vector<1x1x64xf32>
    %182 = vector.shape_cast %181 : vector<1x1x64xf32> to vector<1x64xf32>
    %183 = vector.broadcast %182 : vector<1x64xf32> to vector<16x64xf32>
    %184 = arith.addf %180, %183 : vector<16x64xf32>
    %cst_69 = arith.constant 5.000000e-01 : f32
    %185 = vector.broadcast %cst_69 : f32 to vector<16x64xf32>
    %186 = arith.mulf %185, %184 : vector<16x64xf32>
    %187 = arith.mulf %184, %184 : vector<16x64xf32>
    %188 = arith.mulf %187, %184 : vector<16x64xf32>
    %cst_70 = arith.constant 4.471500e-02 : f32
    %189 = vector.broadcast %cst_70 : f32 to vector<16x64xf32>
    %190 = arith.mulf %189, %188 : vector<16x64xf32>
    %191 = arith.addf %184, %190 : vector<16x64xf32>
    %cst_71 = arith.constant 0.797884583 : f32
    %192 = vector.broadcast %cst_71 : f32 to vector<16x64xf32>
    %193 = arith.mulf %192, %191 : vector<16x64xf32>
    %194 = math.tanh %193 : vector<16x64xf32>
    %cst_72 = arith.constant 1.000000e+00 : f32
    %195 = vector.broadcast %cst_72 : f32 to vector<16x64xf32>
    %196 = arith.addf %195, %194 : vector<16x64xf32>
    %197 = arith.mulf %186, %196 : vector<16x64xf32>
    %198 = arith.truncf %197 : vector<16x64xf32> to vector<16x64xbf16>
    %c0_73 = arith.constant 0 : index
    %c0_74 = arith.constant 0 : index
    %c0_75 = arith.constant 0 : index
    %199 = vector.load %arg12[%c0_73, %c0_74, %c0_75] : memref<2x64x32xbf16, #tpu.memory_space<vmem>>, vector<1x64x32xbf16>
    %200 = vector.shape_cast %199 : vector<1x64x32xbf16> to vector<64x32xbf16>
    %cst_76 = arith.constant dense<0.000000e+00> : vector<16x32xf32>
    %201 = tpu.matmul %198, %200, %cst_76 {dimension_numbers = #tpu.dot_dimension_numbers<[1], [0], [0], [1], [0, 0, 1, 1], [], []>} : vector<16x64xbf16>, vector<64x32xbf16>, vector<16x32xf32> -> vector<16x32xf32>
    %c0_77 = arith.constant 0 : index
    %c0_78 = arith.constant 0 : index
    %c0_79 = arith.constant 0 : index
    %202 = vector.load %arg13[%c0_77, %c0_78, %c0_79] : memref<2x1x32xf32, #tpu.memory_space<vmem>>, vector<1x1x32xf32>
    %203 = vector.shape_cast %202 : vector<1x1x32xf32> to vector<1x32xf32>
    %204 = vector.broadcast %203 : vector<1x32xf32> to vector<16x32xf32>
    %205 = arith.addf %201, %204 : vector<16x32xf32>
    %206 = arith.addf %176, %205 : vector<16x32xf32>
    %c0_80 = arith.constant 0 : index
    %c0_81 = arith.constant 0 : index
    %c0_82 = arith.constant 0 : index
    %207 = vector.load %arg14[%c0_80, %c0_81, %c0_82] : memref<2x1x32xf32, #tpu.memory_space<vmem>>, vector<1x1x32xf32>
    %208 = vector.shape_cast %207 : vector<1x1x32xf32> to vector<1x32xf32>
    %c0_83 = arith.constant 0 : index
    %c0_84 = arith.constant 0 : index
    %c0_85 = arith.constant 0 : index
    %209 = vector.load %arg15[%c0_83, %c0_84, %c0_85] : memref<2x1x32xf32, #tpu.memory_space<vmem>>, vector<1x1x32xf32>
    %210 = vector.shape_cast %209 : vector<1x1x32xf32> to vector<1x32xf32>
    %cst_86 = arith.constant dense<0.000000e+00> : vector<16xf32>
    %211 = vector.multi_reduction <add>, %206, %cst_86 [1] : vector<16x32xf32> to vector<16xf32>
    %212 = vector.shape_cast %211 : vector<16xf32> to vector<16x1xf32>
    %cst_87 = arith.constant 3.200000e+01 : f32
    %213 = vector.broadcast %cst_87 : f32 to vector<16x1xf32>
    %214 = arith.divf %212, %213 : vector<16x1xf32>
    %215 = vector.broadcast %214 : vector<16x1xf32> to vector<16x32xf32>
    %216 = arith.subf %206, %215 : vector<16x32xf32>
    %217 = vector.broadcast %214 : vector<16x1xf32> to vector<16x32xf32>
    %218 = arith.subf %206, %217 : vector<16x32xf32>
    %219 = arith.mulf %216, %218 : vector<16x32xf32>
    %cst_88 = arith.constant dense<0.000000e+00> : vector<16xf32>
    %220 = vector.multi_reduction <add>, %219, %cst_88 [1] : vector<16x32xf32> to vector<16xf32>
    %221 = vector.shape_cast %220 : vector<16xf32> to vector<16x1xf32>
    %cst_89 = arith.constant 3.200000e+01 : f32
    %222 = vector.broadcast %cst_89 : f32 to vector<16x1xf32>
    %223 = arith.divf %221, %222 : vector<16x1xf32>
    %224 = vector.broadcast %214 : vector<16x1xf32> to vector<16x32xf32>
    %225 = arith.subf %206, %224 : vector<16x32xf32>
    %cst_90 = arith.constant 9.99999996E-13 : f32
    %226 = vector.broadcast %cst_90 : f32 to vector<16x1xf32>
    %227 = arith.addf %223, %226 : vector<16x1xf32>
    %228 = math.rsqrt %227 : vector<16x1xf32>
    %229 = vector.broadcast %228 : vector<16x1xf32> to vector<16x32xf32>
    %230 = arith.mulf %225, %229 : vector<16x32xf32>
    %231 = vector.broadcast %208 : vector<1x32xf32> to vector<16x32xf32>
    %232 = arith.mulf %230, %231 : vector<16x32xf32>
    %233 = vector.broadcast %210 : vector<1x32xf32> to vector<16x32xf32>
    %234 = arith.addf %232, %233 : vector<16x32xf32>
    %235 = arith.truncf %234 : vector<16x32xf32> to vector<16x32xbf16>
    %c1_91 = arith.constant 1 : index
    %c0_92 = arith.constant 0 : index
    %c0_93 = arith.constant 0 : index
    %236 = vector.load %arg4[%c1_91, %c0_92, %c0_93] : memref<2x32x96xbf16, #tpu.memory_space<vmem>>, vector<1x32x96xbf16>
    %237 = vector.shape_cast %236 : vector<1x32x96xbf16> to vector<32x96xbf16>
    %cst_94 = arith.constant dense<0.000000e+00> : vector<16x96xf32>
    %238 = tpu.matmul %235, %237, %cst_94 {dimension_numbers = #tpu.dot_dimension_numbers<[1], [0], [0], [1], [0, 0, 1, 1], [], []>} : vector<16x32xbf16>, vector<32x96xbf16>, vector<16x96xf32> -> vector<16x96xf32>
    %c1_95 = arith.constant 1 : index
    %c0_96 = arith.constant 0 : index
    %c0_97 = arith.constant 0 : index
    %239 = vector.load %arg5[%c1_95, %c0_96, %c0_97] : memref<2x1x96xf32, #tpu.memory_space<vmem>>, vector<1x1x96xf32>
    %240 = vector.shape_cast %239 : vector<1x1x96xf32> to vector<1x96xf32>
    %241 = vector.broadcast %240 : vector<1x96xf32> to vector<16x96xf32>
    %242 = arith.addf %238, %241 : vector<16x96xf32>
    %243 = vector.extract_strided_slice %242 {offsets = [0, 0], sizes = [16, 32], strides = [1, 1]} : vector<16x96xf32> to vector<16x32xf32>
    %244 = vector.extract_strided_slice %242 {offsets = [0, 32], sizes = [16, 32], strides = [1, 1]} : vector<16x96xf32> to vector<16x32xf32>
    %245 = vector.extract_strided_slice %242 {offsets = [0, 64], sizes = [16, 32], strides = [1, 1]} : vector<16x96xf32> to vector<16x32xf32>
    %cst_98 = arith.constant 0.000000e+00 : f32
    %246 = vector.broadcast %cst_98 : f32 to vector<16x32xf32>
    %247 = vector.extract_strided_slice %243 {offsets = [0, 0], sizes = [16, 8], strides = [1, 1]} : vector<16x32xf32> to vector<16x8xf32>
    %248 = arith.truncf %247 : vector<16x8xf32> to vector<16x8xbf16>
    %249 = vector.extract_strided_slice %244 {offsets = [0, 0], sizes = [16, 8], strides = [1, 1]} : vector<16x32xf32> to vector<16x8xf32>
    %250 = arith.truncf %249 : vector<16x8xf32> to vector<16x8xbf16>
    %251 = vector.extract_strided_slice %245 {offsets = [0, 0], sizes = [16, 8], strides = [1, 1]} : vector<16x32xf32> to vector<16x8xf32>
    %252 = arith.truncf %251 : vector<16x8xf32> to vector<16x8xbf16>
    %253 = tpu.transpose %250, [1, 0] : vector<16x8xbf16> -> vector<8x16xbf16>
    %cst_99 = arith.constant dense<0.000000e+00> : vector<16x16xf32>
    %254 = tpu.matmul %248, %253, %cst_99 {dimension_numbers = #tpu.dot_dimension_numbers<[1], [0], [0], [1], [0, 0, 1, 1], [], []>} : vector<16x8xbf16>, vector<8x16xbf16>, vector<16x16xf32> -> vector<16x16xf32>
    %255 = arith.addf %254, %27 : vector<16x16xf32>
    %cst_100 = arith.constant dense<0xFF800000> : vector<16xf32>
    %256 = vector.multi_reduction <maximumf>, %255, %cst_100 [1] : vector<16x16xf32> to vector<16xf32>
    %257 = vector.shape_cast %256 : vector<16xf32> to vector<16x1xf32>
    %258 = vector.broadcast %257 : vector<16x1xf32> to vector<16x16xf32>
    %259 = arith.subf %255, %258 : vector<16x16xf32>
    %260 = math.exp %259 : vector<16x16xf32>
    %cst_101 = arith.constant dense<0.000000e+00> : vector<16xf32>
    %261 = vector.multi_reduction <add>, %260, %cst_101 [1] : vector<16x16xf32> to vector<16xf32>
    %262 = vector.shape_cast %261 : vector<16xf32> to vector<16x1xf32>
    %263 = tpu.reciprocal %262 {approx = true} : vector<16x1xf32> -> vector<16x1xf32>
    %264 = vector.broadcast %263 : vector<16x1xf32> to vector<16x16xf32>
    %265 = arith.mulf %260, %264 : vector<16x16xf32>
    %266 = arith.truncf %265 : vector<16x16xf32> to vector<16x16xbf16>
    %cst_102 = arith.constant dense<0.000000e+00> : vector<16x8xf32>
    %267 = tpu.matmul %266, %252, %cst_102 {dimension_numbers = #tpu.dot_dimension_numbers<[1], [0], [0], [1], [0, 0, 1, 1], [], []>} : vector<16x16xbf16>, vector<16x8xbf16>, vector<16x8xf32> -> vector<16x8xf32>
    %268 = arith.truncf %267 : vector<16x8xf32> to vector<16x8xbf16>
    %c4 = arith.constant 4 : index
    %c0_103 = arith.constant 0 : index
    %c0_104 = arith.constant 0 : index
    %269 = vector.load %arg6[%c4, %c0_103, %c0_104] : memref<8x8x32xbf16, #tpu.memory_space<vmem>>, vector<1x8x32xbf16>
    %270 = vector.shape_cast %269 : vector<1x8x32xbf16> to vector<8x32xbf16>
    %cst_105 = arith.constant dense<0.000000e+00> : vector<16x32xf32>
    %271 = tpu.matmul %268, %270, %cst_105 {dimension_numbers = #tpu.dot_dimension_numbers<[1], [0], [0], [1], [0, 0, 1, 1], [], []>} : vector<16x8xbf16>, vector<8x32xbf16>, vector<16x32xf32> -> vector<16x32xf32>
    %272 = arith.addf %246, %271 : vector<16x32xf32>
    %273 = vector.extract_strided_slice %243 {offsets = [0, 8], sizes = [16, 8], strides = [1, 1]} : vector<16x32xf32> to vector<16x8xf32>
    %274 = arith.truncf %273 : vector<16x8xf32> to vector<16x8xbf16>
    %275 = vector.extract_strided_slice %244 {offsets = [0, 8], sizes = [16, 8], strides = [1, 1]} : vector<16x32xf32> to vector<16x8xf32>
    %276 = arith.truncf %275 : vector<16x8xf32> to vector<16x8xbf16>
    %277 = vector.extract_strided_slice %245 {offsets = [0, 8], sizes = [16, 8], strides = [1, 1]} : vector<16x32xf32> to vector<16x8xf32>
    %278 = arith.truncf %277 : vector<16x8xf32> to vector<16x8xbf16>
    %279 = tpu.transpose %276, [1, 0] : vector<16x8xbf16> -> vector<8x16xbf16>
    %cst_106 = arith.constant dense<0.000000e+00> : vector<16x16xf32>
    %280 = tpu.matmul %274, %279, %cst_106 {dimension_numbers = #tpu.dot_dimension_numbers<[1], [0], [0], [1], [0, 0, 1, 1], [], []>} : vector<16x8xbf16>, vector<8x16xbf16>, vector<16x16xf32> -> vector<16x16xf32>
    %281 = arith.addf %280, %27 : vector<16x16xf32>
    %cst_107 = arith.constant dense<0xFF800000> : vector<16xf32>
    %282 = vector.multi_reduction <maximumf>, %281, %cst_107 [1] : vector<16x16xf32> to vector<16xf32>
    %283 = vector.shape_cast %282 : vector<16xf32> to vector<16x1xf32>
    %284 = vector.broadcast %283 : vector<16x1xf32> to vector<16x16xf32>
    %285 = arith.subf %281, %284 : vector<16x16xf32>
    %286 = math.exp %285 : vector<16x16xf32>
    %cst_108 = arith.constant dense<0.000000e+00> : vector<16xf32>
    %287 = vector.multi_reduction <add>, %286, %cst_108 [1] : vector<16x16xf32> to vector<16xf32>
    %288 = vector.shape_cast %287 : vector<16xf32> to vector<16x1xf32>
    %289 = tpu.reciprocal %288 {approx = true} : vector<16x1xf32> -> vector<16x1xf32>
    %290 = vector.broadcast %289 : vector<16x1xf32> to vector<16x16xf32>
    %291 = arith.mulf %286, %290 : vector<16x16xf32>
    %292 = arith.truncf %291 : vector<16x16xf32> to vector<16x16xbf16>
    %cst_109 = arith.constant dense<0.000000e+00> : vector<16x8xf32>
    %293 = tpu.matmul %292, %278, %cst_109 {dimension_numbers = #tpu.dot_dimension_numbers<[1], [0], [0], [1], [0, 0, 1, 1], [], []>} : vector<16x16xbf16>, vector<16x8xbf16>, vector<16x8xf32> -> vector<16x8xf32>
    %294 = arith.truncf %293 : vector<16x8xf32> to vector<16x8xbf16>
    %c5 = arith.constant 5 : index
    %c0_110 = arith.constant 0 : index
    %c0_111 = arith.constant 0 : index
    %295 = vector.load %arg6[%c5, %c0_110, %c0_111] : memref<8x8x32xbf16, #tpu.memory_space<vmem>>, vector<1x8x32xbf16>
    %296 = vector.shape_cast %295 : vector<1x8x32xbf16> to vector<8x32xbf16>
    %cst_112 = arith.constant dense<0.000000e+00> : vector<16x32xf32>
    %297 = tpu.matmul %294, %296, %cst_112 {dimension_numbers = #tpu.dot_dimension_numbers<[1], [0], [0], [1], [0, 0, 1, 1], [], []>} : vector<16x8xbf16>, vector<8x32xbf16>, vector<16x32xf32> -> vector<16x32xf32>
    %298 = arith.addf %272, %297 : vector<16x32xf32>
    %299 = vector.extract_strided_slice %243 {offsets = [0, 16], sizes = [16, 8], strides = [1, 1]} : vector<16x32xf32> to vector<16x8xf32>
    %300 = arith.truncf %299 : vector<16x8xf32> to vector<16x8xbf16>
    %301 = vector.extract_strided_slice %244 {offsets = [0, 16], sizes = [16, 8], strides = [1, 1]} : vector<16x32xf32> to vector<16x8xf32>
    %302 = arith.truncf %301 : vector<16x8xf32> to vector<16x8xbf16>
    %303 = vector.extract_strided_slice %245 {offsets = [0, 16], sizes = [16, 8], strides = [1, 1]} : vector<16x32xf32> to vector<16x8xf32>
    %304 = arith.truncf %303 : vector<16x8xf32> to vector<16x8xbf16>
    %305 = tpu.transpose %302, [1, 0] : vector<16x8xbf16> -> vector<8x16xbf16>
    %cst_113 = arith.constant dense<0.000000e+00> : vector<16x16xf32>
    %306 = tpu.matmul %300, %305, %cst_113 {dimension_numbers = #tpu.dot_dimension_numbers<[1], [0], [0], [1], [0, 0, 1, 1], [], []>} : vector<16x8xbf16>, vector<8x16xbf16>, vector<16x16xf32> -> vector<16x16xf32>
    %307 = arith.addf %306, %27 : vector<16x16xf32>
    %cst_114 = arith.constant dense<0xFF800000> : vector<16xf32>
    %308 = vector.multi_reduction <maximumf>, %307, %cst_114 [1] : vector<16x16xf32> to vector<16xf32>
    %309 = vector.shape_cast %308 : vector<16xf32> to vector<16x1xf32>
    %310 = vector.broadcast %309 : vector<16x1xf32> to vector<16x16xf32>
    %311 = arith.subf %307, %310 : vector<16x16xf32>
    %312 = math.exp %311 : vector<16x16xf32>
    %cst_115 = arith.constant dense<0.000000e+00> : vector<16xf32>
    %313 = vector.multi_reduction <add>, %312, %cst_115 [1] : vector<16x16xf32> to vector<16xf32>
    %314 = vector.shape_cast %313 : vector<16xf32> to vector<16x1xf32>
    %315 = tpu.reciprocal %314 {approx = true} : vector<16x1xf32> -> vector<16x1xf32>
    %316 = vector.broadcast %315 : vector<16x1xf32> to vector<16x16xf32>
    %317 = arith.mulf %312, %316 : vector<16x16xf32>
    %318 = arith.truncf %317 : vector<16x16xf32> to vector<16x16xbf16>
    %cst_116 = arith.constant dense<0.000000e+00> : vector<16x8xf32>
    %319 = tpu.matmul %318, %304, %cst_116 {dimension_numbers = #tpu.dot_dimension_numbers<[1], [0], [0], [1], [0, 0, 1, 1], [], []>} : vector<16x16xbf16>, vector<16x8xbf16>, vector<16x8xf32> -> vector<16x8xf32>
    %320 = arith.truncf %319 : vector<16x8xf32> to vector<16x8xbf16>
    %c6 = arith.constant 6 : index
    %c0_117 = arith.constant 0 : index
    %c0_118 = arith.constant 0 : index
    %321 = vector.load %arg6[%c6, %c0_117, %c0_118] : memref<8x8x32xbf16, #tpu.memory_space<vmem>>, vector<1x8x32xbf16>
    %322 = vector.shape_cast %321 : vector<1x8x32xbf16> to vector<8x32xbf16>
    %cst_119 = arith.constant dense<0.000000e+00> : vector<16x32xf32>
    %323 = tpu.matmul %320, %322, %cst_119 {dimension_numbers = #tpu.dot_dimension_numbers<[1], [0], [0], [1], [0, 0, 1, 1], [], []>} : vector<16x8xbf16>, vector<8x32xbf16>, vector<16x32xf32> -> vector<16x32xf32>
    %324 = arith.addf %298, %323 : vector<16x32xf32>
    %325 = vector.extract_strided_slice %243 {offsets = [0, 24], sizes = [16, 8], strides = [1, 1]} : vector<16x32xf32> to vector<16x8xf32>
    %326 = arith.truncf %325 : vector<16x8xf32> to vector<16x8xbf16>
    %327 = vector.extract_strided_slice %244 {offsets = [0, 24], sizes = [16, 8], strides = [1, 1]} : vector<16x32xf32> to vector<16x8xf32>
    %328 = arith.truncf %327 : vector<16x8xf32> to vector<16x8xbf16>
    %329 = vector.extract_strided_slice %245 {offsets = [0, 24], sizes = [16, 8], strides = [1, 1]} : vector<16x32xf32> to vector<16x8xf32>
    %330 = arith.truncf %329 : vector<16x8xf32> to vector<16x8xbf16>
    %331 = tpu.transpose %328, [1, 0] : vector<16x8xbf16> -> vector<8x16xbf16>
    %cst_120 = arith.constant dense<0.000000e+00> : vector<16x16xf32>
    %332 = tpu.matmul %326, %331, %cst_120 {dimension_numbers = #tpu.dot_dimension_numbers<[1], [0], [0], [1], [0, 0, 1, 1], [], []>} : vector<16x8xbf16>, vector<8x16xbf16>, vector<16x16xf32> -> vector<16x16xf32>
    %333 = arith.addf %332, %27 : vector<16x16xf32>
    %cst_121 = arith.constant dense<0xFF800000> : vector<16xf32>
    %334 = vector.multi_reduction <maximumf>, %333, %cst_121 [1] : vector<16x16xf32> to vector<16xf32>
    %335 = vector.shape_cast %334 : vector<16xf32> to vector<16x1xf32>
    %336 = vector.broadcast %335 : vector<16x1xf32> to vector<16x16xf32>
    %337 = arith.subf %333, %336 : vector<16x16xf32>
    %338 = math.exp %337 : vector<16x16xf32>
    %cst_122 = arith.constant dense<0.000000e+00> : vector<16xf32>
    %339 = vector.multi_reduction <add>, %338, %cst_122 [1] : vector<16x16xf32> to vector<16xf32>
    %340 = vector.shape_cast %339 : vector<16xf32> to vector<16x1xf32>
    %341 = tpu.reciprocal %340 {approx = true} : vector<16x1xf32> -> vector<16x1xf32>
    %342 = vector.broadcast %341 : vector<16x1xf32> to vector<16x16xf32>
    %343 = arith.mulf %338, %342 : vector<16x16xf32>
    %344 = arith.truncf %343 : vector<16x16xf32> to vector<16x16xbf16>
    %cst_123 = arith.constant dense<0.000000e+00> : vector<16x8xf32>
    %345 = tpu.matmul %344, %330, %cst_123 {dimension_numbers = #tpu.dot_dimension_numbers<[1], [0], [0], [1], [0, 0, 1, 1], [], []>} : vector<16x16xbf16>, vector<16x8xbf16>, vector<16x8xf32> -> vector<16x8xf32>
    %346 = arith.truncf %345 : vector<16x8xf32> to vector<16x8xbf16>
    %c7 = arith.constant 7 : index
    %c0_124 = arith.constant 0 : index
    %c0_125 = arith.constant 0 : index
    %347 = vector.load %arg6[%c7, %c0_124, %c0_125] : memref<8x8x32xbf16, #tpu.memory_space<vmem>>, vector<1x8x32xbf16>
    %348 = vector.shape_cast %347 : vector<1x8x32xbf16> to vector<8x32xbf16>
    %cst_126 = arith.constant dense<0.000000e+00> : vector<16x32xf32>
    %349 = tpu.matmul %346, %348, %cst_126 {dimension_numbers = #tpu.dot_dimension_numbers<[1], [0], [0], [1], [0, 0, 1, 1], [], []>} : vector<16x8xbf16>, vector<8x32xbf16>, vector<16x32xf32> -> vector<16x32xf32>
    %350 = arith.addf %324, %349 : vector<16x32xf32>
    %351 = arith.addf %234, %350 : vector<16x32xf32>
    %c1_127 = arith.constant 1 : index
    %c0_128 = arith.constant 0 : index
    %c0_129 = arith.constant 0 : index
    %352 = vector.load %arg7[%c1_127, %c0_128, %c0_129] : memref<2x1x32xf32, #tpu.memory_space<vmem>>, vector<1x1x32xf32>
    %353 = vector.shape_cast %352 : vector<1x1x32xf32> to vector<1x32xf32>
    %354 = vector.broadcast %353 : vector<1x32xf32> to vector<16x32xf32>
    %355 = arith.addf %351, %354 : vector<16x32xf32>
    %c1_130 = arith.constant 1 : index
    %c0_131 = arith.constant 0 : index
    %c0_132 = arith.constant 0 : index
    %356 = vector.load %arg8[%c1_130, %c0_131, %c0_132] : memref<2x1x32xf32, #tpu.memory_space<vmem>>, vector<1x1x32xf32>
    %357 = vector.shape_cast %356 : vector<1x1x32xf32> to vector<1x32xf32>
    %c1_133 = arith.constant 1 : index
    %c0_134 = arith.constant 0 : index
    %c0_135 = arith.constant 0 : index
    %358 = vector.load %arg9[%c1_133, %c0_134, %c0_135] : memref<2x1x32xf32, #tpu.memory_space<vmem>>, vector<1x1x32xf32>
    %359 = vector.shape_cast %358 : vector<1x1x32xf32> to vector<1x32xf32>
    %cst_136 = arith.constant dense<0.000000e+00> : vector<16xf32>
    %360 = vector.multi_reduction <add>, %355, %cst_136 [1] : vector<16x32xf32> to vector<16xf32>
    %361 = vector.shape_cast %360 : vector<16xf32> to vector<16x1xf32>
    %cst_137 = arith.constant 3.200000e+01 : f32
    %362 = vector.broadcast %cst_137 : f32 to vector<16x1xf32>
    %363 = arith.divf %361, %362 : vector<16x1xf32>
    %364 = vector.broadcast %363 : vector<16x1xf32> to vector<16x32xf32>
    %365 = arith.subf %355, %364 : vector<16x32xf32>
    %366 = vector.broadcast %363 : vector<16x1xf32> to vector<16x32xf32>
    %367 = arith.subf %355, %366 : vector<16x32xf32>
    %368 = arith.mulf %365, %367 : vector<16x32xf32>
    %cst_138 = arith.constant dense<0.000000e+00> : vector<16xf32>
    %369 = vector.multi_reduction <add>, %368, %cst_138 [1] : vector<16x32xf32> to vector<16xf32>
    %370 = vector.shape_cast %369 : vector<16xf32> to vector<16x1xf32>
    %cst_139 = arith.constant 3.200000e+01 : f32
    %371 = vector.broadcast %cst_139 : f32 to vector<16x1xf32>
    %372 = arith.divf %370, %371 : vector<16x1xf32>
    %373 = vector.broadcast %363 : vector<16x1xf32> to vector<16x32xf32>
    %374 = arith.subf %355, %373 : vector<16x32xf32>
    %cst_140 = arith.constant 9.99999996E-13 : f32
    %375 = vector.broadcast %cst_140 : f32 to vector<16x1xf32>
    %376 = arith.addf %372, %375 : vector<16x1xf32>
    %377 = math.rsqrt %376 : vector<16x1xf32>
    %378 = vector.broadcast %377 : vector<16x1xf32> to vector<16x32xf32>
    %379 = arith.mulf %374, %378 : vector<16x32xf32>
    %380 = vector.broadcast %357 : vector<1x32xf32> to vector<16x32xf32>
    %381 = arith.mulf %379, %380 : vector<16x32xf32>
    %382 = vector.broadcast %359 : vector<1x32xf32> to vector<16x32xf32>
    %383 = arith.addf %381, %382 : vector<16x32xf32>
    %384 = arith.truncf %383 : vector<16x32xf32> to vector<16x32xbf16>
    %c1_141 = arith.constant 1 : index
    %c0_142 = arith.constant 0 : index
    %c0_143 = arith.constant 0 : index
    %385 = vector.load %arg10[%c1_141, %c0_142, %c0_143] : memref<2x32x64xbf16, #tpu.memory_space<vmem>>, vector<1x32x64xbf16>
    %386 = vector.shape_cast %385 : vector<1x32x64xbf16> to vector<32x64xbf16>
    %cst_144 = arith.constant dense<0.000000e+00> : vector<16x64xf32>
    %387 = tpu.matmul %384, %386, %cst_144 {dimension_numbers = #tpu.dot_dimension_numbers<[1], [0], [0], [1], [0, 0, 1, 1], [], []>} : vector<16x32xbf16>, vector<32x64xbf16>, vector<16x64xf32> -> vector<16x64xf32>
    %c1_145 = arith.constant 1 : index
    %c0_146 = arith.constant 0 : index
    %c0_147 = arith.constant 0 : index
    %388 = vector.load %arg11[%c1_145, %c0_146, %c0_147] : memref<2x1x64xf32, #tpu.memory_space<vmem>>, vector<1x1x64xf32>
    %389 = vector.shape_cast %388 : vector<1x1x64xf32> to vector<1x64xf32>
    %390 = vector.broadcast %389 : vector<1x64xf32> to vector<16x64xf32>
    %391 = arith.addf %387, %390 : vector<16x64xf32>
    %cst_148 = arith.constant 5.000000e-01 : f32
    %392 = vector.broadcast %cst_148 : f32 to vector<16x64xf32>
    %393 = arith.mulf %392, %391 : vector<16x64xf32>
    %394 = arith.mulf %391, %391 : vector<16x64xf32>
    %395 = arith.mulf %394, %391 : vector<16x64xf32>
    %cst_149 = arith.constant 4.471500e-02 : f32
    %396 = vector.broadcast %cst_149 : f32 to vector<16x64xf32>
    %397 = arith.mulf %396, %395 : vector<16x64xf32>
    %398 = arith.addf %391, %397 : vector<16x64xf32>
    %cst_150 = arith.constant 0.797884583 : f32
    %399 = vector.broadcast %cst_150 : f32 to vector<16x64xf32>
    %400 = arith.mulf %399, %398 : vector<16x64xf32>
    %401 = math.tanh %400 : vector<16x64xf32>
    %cst_151 = arith.constant 1.000000e+00 : f32
    %402 = vector.broadcast %cst_151 : f32 to vector<16x64xf32>
    %403 = arith.addf %402, %401 : vector<16x64xf32>
    %404 = arith.mulf %393, %403 : vector<16x64xf32>
    %405 = arith.truncf %404 : vector<16x64xf32> to vector<16x64xbf16>
    %c1_152 = arith.constant 1 : index
    %c0_153 = arith.constant 0 : index
    %c0_154 = arith.constant 0 : index
    %406 = vector.load %arg12[%c1_152, %c0_153, %c0_154] : memref<2x64x32xbf16, #tpu.memory_space<vmem>>, vector<1x64x32xbf16>
    %407 = vector.shape_cast %406 : vector<1x64x32xbf16> to vector<64x32xbf16>
    %cst_155 = arith.constant dense<0.000000e+00> : vector<16x32xf32>
    %408 = tpu.matmul %405, %407, %cst_155 {dimension_numbers = #tpu.dot_dimension_numbers<[1], [0], [0], [1], [0, 0, 1, 1], [], []>} : vector<16x64xbf16>, vector<64x32xbf16>, vector<16x32xf32> -> vector<16x32xf32>
    %c1_156 = arith.constant 1 : index
    %c0_157 = arith.constant 0 : index
    %c0_158 = arith.constant 0 : index
    %409 = vector.load %arg13[%c1_156, %c0_157, %c0_158] : memref<2x1x32xf32, #tpu.memory_space<vmem>>, vector<1x1x32xf32>
    %410 = vector.shape_cast %409 : vector<1x1x32xf32> to vector<1x32xf32>
    %411 = vector.broadcast %410 : vector<1x32xf32> to vector<16x32xf32>
    %412 = arith.addf %408, %411 : vector<16x32xf32>
    %413 = arith.addf %383, %412 : vector<16x32xf32>
    %c1_159 = arith.constant 1 : index
    %c0_160 = arith.constant 0 : index
    %c0_161 = arith.constant 0 : index
    %414 = vector.load %arg14[%c1_159, %c0_160, %c0_161] : memref<2x1x32xf32, #tpu.memory_space<vmem>>, vector<1x1x32xf32>
    %415 = vector.shape_cast %414 : vector<1x1x32xf32> to vector<1x32xf32>
    %c1_162 = arith.constant 1 : index
    %c0_163 = arith.constant 0 : index
    %c0_164 = arith.constant 0 : index
    %416 = vector.load %arg15[%c1_162, %c0_163, %c0_164] : memref<2x1x32xf32, #tpu.memory_space<vmem>>, vector<1x1x32xf32>
    %417 = vector.shape_cast %416 : vector<1x1x32xf32> to vector<1x32xf32>
    %cst_165 = arith.constant dense<0.000000e+00> : vector<16xf32>
    %418 = vector.multi_reduction <add>, %413, %cst_165 [1] : vector<16x32xf32> to vector<16xf32>
    %419 = vector.shape_cast %418 : vector<16xf32> to vector<16x1xf32>
    %cst_166 = arith.constant 3.200000e+01 : f32
    %420 = vector.broadcast %cst_166 : f32 to vector<16x1xf32>
    %421 = arith.divf %419, %420 : vector<16x1xf32>
    %422 = vector.broadcast %421 : vector<16x1xf32> to vector<16x32xf32>
    %423 = arith.subf %413, %422 : vector<16x32xf32>
    %424 = vector.broadcast %421 : vector<16x1xf32> to vector<16x32xf32>
    %425 = arith.subf %413, %424 : vector<16x32xf32>
    %426 = arith.mulf %423, %425 : vector<16x32xf32>
    %cst_167 = arith.constant dense<0.000000e+00> : vector<16xf32>
    %427 = vector.multi_reduction <add>, %426, %cst_167 [1] : vector<16x32xf32> to vector<16xf32>
    %428 = vector.shape_cast %427 : vector<16xf32> to vector<16x1xf32>
    %cst_168 = arith.constant 3.200000e+01 : f32
    %429 = vector.broadcast %cst_168 : f32 to vector<16x1xf32>
    %430 = arith.divf %428, %429 : vector<16x1xf32>
    %431 = vector.broadcast %421 : vector<16x1xf32> to vector<16x32xf32>
    %432 = arith.subf %413, %431 : vector<16x32xf32>
    %cst_169 = arith.constant 9.99999996E-13 : f32
    %433 = vector.broadcast %cst_169 : f32 to vector<16x1xf32>
    %434 = arith.addf %430, %433 : vector<16x1xf32>
    %435 = math.rsqrt %434 : vector<16x1xf32>
    %436 = vector.broadcast %435 : vector<16x1xf32> to vector<16x32xf32>
    %437 = arith.mulf %432, %436 : vector<16x32xf32>
    %438 = vector.broadcast %415 : vector<1x32xf32> to vector<16x32xf32>
    %439 = arith.mulf %437, %438 : vector<16x32xf32>
    %440 = vector.broadcast %417 : vector<1x32xf32> to vector<16x32xf32>
    %441 = arith.addf %439, %440 : vector<16x32xf32>
    %442 = arith.truncf %441 : vector<16x32xf32> to vector<16x32xbf16>
    %c0_170 = arith.constant 0 : index
    %c0_171 = arith.constant 0 : index
    %443 = vector.load %arg16[%c0_170, %c0_171] : memref<32x128xbf16, #tpu.memory_space<vmem>>, vector<32x128xbf16>
    %cst_172 = arith.constant dense<0.000000e+00> : vector<16x128xf32>
    %444 = tpu.matmul %442, %443, %cst_172 {dimension_numbers = #tpu.dot_dimension_numbers<[1], [0], [0], [1], [0, 0, 1, 1], [], []>} : vector<16x32xbf16>, vector<32x128xbf16>, vector<16x128xf32> -> vector<16x128xf32>
    %c0_173 = arith.constant 0 : index
    %c0_174 = arith.constant 0 : index
    %445 = vector.load %arg17[%c0_173, %c0_174] : memref<1x128xf32, #tpu.memory_space<vmem>>, vector<1x128xf32>
    %446 = vector.broadcast %445 : vector<1x128xf32> to vector<16x128xf32>
    %447 = arith.addf %444, %446 : vector<16x128xf32>
    %c0_175 = arith.constant 0 : index
    %c0_176 = arith.constant 0 : index
    %448 = vector.load %arg18[%c0_175, %c0_176] : memref<16x128xf32, #tpu.memory_space<vmem>>, vector<16x128xf32>
    tpu.vector_store %arg18[%c0_175, %c0_176], %447 {strides = array<i32>} : memref<16x128xf32, #tpu.memory_space<vmem>>, vector<16x128xf32>,
    return
  }
}

</mosaic_0001>

<bundles_post_ra>
// kernel: tpu_custom_call.1
= control target key start
LH: loop header
LB: loop body
LE: loop exit
PB: predicated region body
PF: predicated region fallthrough
CT: control target
= control target key end

     0   :  { %s3652_s0 = inlined_call_operand.hbm [shape: f32[16,32], index: 0, kind: input, shape index: {}]   ;;  %s3653_s1 = inlined_call_operand.hbm [shape: f32[16,16], index: 1, kind: input, shape index: {}]   ;;  %s3654_s2 = inlined_call_operand.hbm [shape: f32[1,32], index: 2, kind: input, shape index: {}]   ;;  %s3655_s3 = inlined_call_operand.hbm [shape: f32[1,32], index: 3, kind: input, shape index: {}]   ;;  %s3656_s4 = inlined_call_operand.vmem [shape: bf16[2,32,96], index: 4, kind: input, shape index: {}]   ;;  %s3657_s5 = inlined_call_operand.hbm [shape: f32[2,1,96], index: 5, kind: input, shape index: {}]   ;;  %s3658_s6 = inlined_call_operand.vmem [shape: bf16[8,8,32], index: 6, kind: input, shape index: {}]   ;;  %s3659_s7 = inlined_call_operand.hbm [shape: f32[2,1,32], index: 7, kind: input, shape index: {}]   ;;  %s3660_s8 = inlined_call_operand.hbm [shape: f32[2,1,32], index: 8, kind: input, shape index: {}]   ;;  %s3661_s9 = inlined_call_operand.hbm [shape: f32[2,1,32], index: 9, kind: input, shape index: {}]   ;;  %s3662_s10 = inlined_call_operand.vmem [shape: bf16[2,32,64], index: 10, kind: input, shape index: {}]   ;;  %s3663_s11 = inlined_call_operand.vmem [shape: f32[2,1,64], index: 11, kind: input, shape index: {}]   ;;  %s3664_s12 = inlined_call_operand.vmem [shape: bf16[2,64,32], index: 12, kind: input, shape index: {}]   ;;  %s3665_s13 = inlined_call_operand.vmem [shape: f32[2,1,32], index: 13, kind: input, shape index: {}]   ;;  %s3666_s14 = inlined_call_operand.vmem [shape: f32[2,1,32], index: 14, kind: input, shape index: {}]   ;;  %s3667_s15 = inlined_call_operand.vmem [shape: f32[2,1,32], index: 15, kind: input, shape index: {}]   ;;  %s3668_s16 = inlined_call_operand.vmem [shape: bf16[32,128], index: 16, kind: input, shape index: {}]   ;;  %s3669_s17 = inlined_call_operand.vmem [shape: f32[1,128], index: 17, kind: input, shape index: {}]   ;;  %s3670_s18 = inlined_call_operand.hbm [shape: f32[16,128], index: 18, kind: output, shape index: {}]  }
   0x1   :  { %3671 = sst [smem:[#allocation23_spill]] %s3652_s0 }
   0x2   :  { %3672 = sst [smem:[#allocation24_spill]] %s3653_s1 }
   0x3   :  { %3673 = sst [smem:[#allocation25_spill]] %s3654_s2 }
   0x4   :  { %23 = vsyncpa [#allocation3], 0 }
   0x5   :  { %24 = vsyncpa [#allocation6], 0 }
   0x6   :  { %25 = vsyncpa [#allocation9], 0 }
   0x7   :  { %26 = vsyncpa [#allocation12], 0 }
   0x8   :  { %27 = vsyncpa [#allocation15], 0 }
   0x9   :  { %28 = vsyncpa [#allocation4], 0  ;;  %s3081_s27 = smov [#allocation5]   ;;  %s3082_s29 = smov [#allocation8]  }
   0xa   :  { %s46_s28 = sshll.u32 %s3081_s27, 4  ;;  %s69_s30 = sshll.u32 %s3082_s29, 4  ;;  %s47_s28 = int_to_ptr.vmem [resolvable:$true] %s46_s28  ;;  %s70_s30 = int_to_ptr.vmem [resolvable:$true] %s69_s30 }
   0xb   :  { %s2897_s0 = scalar_lea.vmem %s47_s28, 256  ;;  %p2902_p1 = scmp.lt.s32.totalorder %s47_s28, %s47_s28 }
   0xc   :  { %p2898_p0 = scmp.ne.s32.totalorder %s47_s28, %s2897_s0  ;;  %p2903_p2 = scmp.lt.s32.totalorder %s2897_s0, %s2897_s0 }
   0xe   :  { %p2904_p3 = por %p2903_p2, %p2902_p1 }
  0x10   :  { %p2905_p4 = pnand %p2904_p3, %p2898_p0 }
  0x12   :  { %2908 = shalt.err (!%p2905_p4)
}
  0x13   :  { %s3083_s19 = smov 128   ;;  %s3084_s1 = smov 8  }
  0x14   :  { %s3674_s22 = sld [smem:[#allocation24_spill]]  ;;  %s2917_s2 = scalar_lea.vmem %s70_s30, 16 }
  0x15   :  { %p2918_p5 = scmp.ne.s32.totalorder %s70_s30, %s2917_s2  ;;  %s2921_s23 = scalar_lea.vmem %s70_s30, 32 }
  0x16   :  { %p2922_p6 = scmp.lt.s32.totalorder %s70_s30, %s70_s30  ;;  %p2923_p7 = scmp.lt.s32.totalorder %s2921_s23, %s2917_s2 }
  0x18   :  { %p2924_p8 = por %p2923_p7, %p2922_p6 }
  0x1a   :  { %52 = dma.hbm_to_vmem [thread:$0]  %s3674_s22, 256, %s47_s28, [#allocation6], %s3083_s19, %s3083_s19, %s3084_s1  }
  0x1b   :  { %p2925_p9 = pnand %p2924_p8, %p2918_p5 }
  0x1d   :  { %2928 = shalt.err (!%p2925_p9)
}
  0x1e   :  { %72 = dma.hbm_to_vmem [thread:$0]  %s3655_s3, 16, %s70_s30, [#allocation9]  }
  0x1f   :  { %s3085_s26 = smov [#allocation11]   ;;  %s3086_s29 = smov [#allocation2]  }
  0x20   :  { %s94_s27 = sshll.u32 %s3085_s26, 4  ;;  %s34_s0 = sshll.u32 %s3086_s29, 4  ;;  %s95_s27 = int_to_ptr.vmem [resolvable:$true] %s94_s27  ;;  %s35_s0 = int_to_ptr.vmem [resolvable:$true] %s34_s0 }
  0x21   :  { %s2937_s20 = scalar_lea.vmem %s95_s27, 32  ;;  %p2942_p11 = scmp.lt.s32.totalorder %s95_s27, %s95_s27 }
  0x22   :  { %p2938_p10 = scmp.ne.s32.totalorder %s95_s27, %s2937_s20  ;;  %p2943_p12 = scmp.lt.s32.totalorder %s2937_s20, %s2937_s20 }
  0x24   :  { %p2944_p13 = por %p2943_p12, %p2942_p11 }
  0x26   :  { %p2945_p0 = pnand %p2944_p13, %p2938_p10 }
  0x28   :  { %2948 = shalt.err (!%p2945_p0)
}
  0x29   :  { %s3087_s28 = smov 16   ;;  %s3088_s21 = smov 1  }
  0x2a   :  { %100 = dma.hbm_to_vmem [thread:$0]  %s3659_s7, 32, %s95_s27, [#allocation12], %s3087_s28, %s3087_s28, %s3088_s21  }
  0x2b   :  { %s2957_s30 = scalar_lea.vmem %s35_s0, 256  ;;  %p2962_p2 = scmp.lt.s32.totalorder %s35_s0, %s35_s0 }
  0x2c   :  { %p2958_p1 = scmp.ne.s32.totalorder %s35_s0, %s2957_s30  ;;  %p2963_p3 = scmp.lt.s32.totalorder %s2957_s30, %s2957_s30 }
  0x2e   :  { %p2964_p4 = por %p2963_p3, %p2962_p2 }
  0x30   :  { %p2965_p5 = pnand %p2964_p4, %p2958_p1 }
  0x32   :  { %2968 = shalt.err (!%p2965_p5)
}
  0x33   :  { %s3675_s24 = sld [smem:[#allocation23_spill]]  ;;  %s3089_s25 = smov [#allocation7]  }
  0x34   :  { %s59_s26 = sshll.u32 %s3089_s25, 4  ;;  %s3090_s29 = smov [#allocation10]   ;;  %s60_s26 = int_to_ptr.vmem [resolvable:$true] %s59_s26 }
  0x35   :  { %s80_s20 = sshll.u32 %s3090_s29, 4  ;;  %s2977_s7 = scalar_lea.vmem %s60_s26, 16  ;;  %s81_s20 = int_to_ptr.vmem [resolvable:$true] %s80_s20 }
  0x36   :  { %p2978_p6 = scmp.ne.s32.totalorder %s60_s26, %s2977_s7  ;;  %s2981_s27 = scalar_lea.vmem %s60_s26, 32 }
  0x37   :  { %p2982_p7 = scmp.lt.s32.totalorder %s60_s26, %s60_s26  ;;  %p2983_p8 = scmp.lt.s32.totalorder %s2981_s27, %s2977_s7 }
  0x39   :  { %40 = dma.hbm_to_vmem [thread:$0]  %s3675_s24, 256, %s35_s0, [#allocation3], %s3083_s19, %s3083_s19, %s3084_s1  }
  0x3a   :  { %p2984_p9 = por %p2983_p8, %p2982_p7 }
  0x3c   :  { %p2985_p10 = pnand %p2984_p9, %p2978_p6 }
  0x3e   :  { %2988 = shalt.err (!%p2985_p10)
}
  0x3f   :  { %s3676_s30 = sld [smem:[#allocation25_spill]]  ;;  %s2997_s2 = scalar_lea.vmem %s81_s20, 32 }
  0x40   :  { %p2998_p11 = scmp.ne.s32.totalorder %s81_s20, %s2997_s2  ;;  %p3002_p12 = scmp.lt.s32.totalorder %s81_s20, %s81_s20 }
  0x41   :  { %p3003_p13 = scmp.lt.s32.totalorder %s2997_s2, %s2997_s2 }
  0x43   :  { %p3004_p0 = por %p3003_p13, %p3002_p12 }
  0x45   :  { %62 = dma.hbm_to_vmem [thread:$0]  %s3676_s30, 16, %s60_s26, [#allocation6]  }
  0x46   :  { %p3005_p1 = pnand %p3004_p0, %p2998_p11 }
  0x48   :  { %3008 = shalt.err (!%p3005_p1)
}
  0x49   :  { %86 = dma.hbm_to_vmem [thread:$0]  %s3657_s5, 32, %s81_s20, [#allocation9], %s3087_s28, %s3087_s28, %s3088_s21  }
  0x4a   :  { %s3091_s24 = smov [#allocation13]   ;;  %s3092_s29 = smov [#allocation14]  }
  0x4b   :  { %s106_s25 = sshll.u32 %s3091_s24, 4  ;;  %s118_s7 = sshll.u32 %s3092_s29, 4  ;;  %s107_s25 = int_to_ptr.vmem [resolvable:$true] %s106_s25  ;;  %s119_s7 = int_to_ptr.vmem [resolvable:$true] %s118_s7 }
  0x4c   :  { %s3017_s26 = scalar_lea.vmem %s107_s25, 32  ;;  %p3022_p3 = scmp.lt.s32.totalorder %s107_s25, %s107_s25 }
  0x4d   :  { %p3018_p2 = scmp.ne.s32.totalorder %s107_s25, %s3017_s26  ;;  %p3023_p4 = scmp.lt.s32.totalorder %s3017_s26, %s3017_s26 }
  0x4f   :  { %p3024_p5 = por %p3023_p4, %p3022_p3 }
  0x51   :  { %p3025_p6 = pnand %p3024_p5, %p3018_p2 }
  0x53   :  { %3028 = shalt.err (!%p3025_p6)
}
  0x54   :  { %112 = dma.hbm_to_vmem [thread:$0]  %s3660_s8, 32, %s107_s25, [#allocation12], %s3087_s28, %s3087_s28, %s3088_s21  }
  0x55   :  { %s3037_s5 = scalar_lea.vmem %s119_s7, 32  ;;  %p3042_p8 = scmp.lt.s32.totalorder %s119_s7, %s119_s7 }
  0x56   :  { %p3038_p7 = scmp.ne.s32.totalorder %s119_s7, %s3037_s5  ;;  %p3043_p9 = scmp.lt.s32.totalorder %s3037_s5, %s3037_s5 }
  0x58   :  { %p3044_p10 = por %p3043_p9, %p3042_p8 }
  0x5a   :  { %p3045_p11 = pnand %p3044_p10, %p3038_p7 }
  0x5c   :  { %3048 = shalt.err (!%p3045_p11)
}
  0x5d   :  { %124 = dma.hbm_to_vmem [thread:$0]  %s3661_s9, 32, %s119_s7, [#allocation15], %s3087_s28, %s3087_s28, %s3088_s21  }
  0x5e   :  { %3069 = dma.done.wait [#allocation3], 256  }
  0x5f   :  { %3070 = vsyncadd [#allocation3], 4294967040 }
  0x60   :  { %3071 = dma.done.wait [#allocation6], 272  }
  0x61   :  { %3072 = vsyncadd [#allocation6], 4294967024 }
  0x62   :  { %3073 = dma.done.wait [#allocation9], 48  }
  0x63   :  { %3074 = vsyncadd [#allocation9], 4294967248 }
  0x64   :  { %3075 = dma.done.wait [#allocation12], 64  }
  0x65   :  { %3076 = vsyncadd [#allocation12], 4294967232 }
  0x66   :  { %3077 = dma.done.wait [#allocation15], 32  }
  0x67   :  { %3078 = vsyncadd [#allocation15], 4294967264  ;;  %vm170_vm0 = vcmask 261120   ;;  %v166_v0 = vld [vmem:[#allocation2] sm:$0xff]  ;;  %v167_v1 = vld [vmem:[#allocation2 + $0x8] sm:$0xff]  ;;  %v3093_v15 = vmov 0.0  }
  0x68   :  { %v171_v2 = vsel %vm170_vm0, %v166_v0, 0.0  ;;  %v174_v3 = vsel %vm170_vm0, %v167_v1, 0.0  ;;  %v2777_v14 = vld [vmem:[%s3656_s4 + $0x8] sm:$0xff]   ;;  %2543 = vmatprep.subr.bf16.mxu0 %v3093_v15  ;;  %vm3094_vm1 = vmmov 0   ;;  %v2778_v16 = vld [vmem:[%s3656_s4] sm:$0xff]   ;;  %2551 = vmatprep.subr.bf16.mxu1 %v3093_v15  ;;  %s3095_s30 = smov 88  }
  0x69   :  { %172 = vadd.xlane.f32.xlu0 %v171_v2  ;;  %2547 = vmatprep.mubr.msk.bf16.mxu0 %vm3094_vm1, %v3093_v15  ;;  %v2375_v25 = vld [vmem:[#allocation7] ss:$0 sm:$0xff]  ;;  %v2376_v29 = vld [vmem:[#allocation8] ss:$0 sm:$0xff]  ;;  %v2377_v35 = vld [vmem:[#allocation10] ss:$0 sm:$0xff] }
  0x6a   :  { %2544 = vmatpush3.bf16.msra.mxu0 %v2777_v14  ;;  %2553 = vmatprep.mubr.msk.bf16.mxu1 %vm3094_vm1, %v3093_v15  ;;  %s3096_s2 = smov 96   ;;  %s3097_s0 = smov 120   ;;  %vm288_vm2 = vcmask 64512   ;;  %v3290_v47 = vld [vmem:[#allocation5] sm:$0xff]  ;;  %vm336_vm3 = vcmask 130048   ;;  %v3293_v51 = vld [vmem:[#allocation5 + $0x8] sm:$0xff] }
  0x6b   :  { %2545 = vmatprep.subr.bf16.mxu0 %v3093_v15  ;;  %s3098_s23 = smov 64   ;;  %s3099_s24 = smov 80   ;;  %vm536_vm4 = vcmask 1043456   ;;  %vm1155_vm5 = vcmask 523264  }
  0x6c   :  { %s3100_s25 = smov 112   ;;  %s3101_s29 = smov 56  }
  0x6d   :  { %175 = vadd.xlane.f32.xlu0 %v174_v3  ;;  %s3102_s5 = smov 48   ;;  %s3103_s20 = smov 104  }
  0x6e   :  { %2546 = vmatpush3.bf16.msra.mxu0 %v2778_v16  ;;  %s3104_s3 = smov 72   ;;  %s3105_s28 = smov 40  }
  0x6f   :  { %2557 = vmatprep.subr.bf16.mxu0 %v3093_v15 }
  0xf2   :  { %v173_v4 = vpop.xlane.xlu0 %172 }
  0xf3   :  { %v178_v5 = vmul.f32 0.03125, %v173_v4 }
  0xf5   :  { %v180_v6 = vsub.f32 %v166_v0, %v178_v5 }
  0xf6   :  { %v176_v7 = vpop.xlane.xlu0 %175 }
  0xf7   :  { %v179_v8 = vmul.f32 0.03125, %v176_v7  ;;  %v182_v9 = vmul.f32 %v180_v6, %v180_v6 }
  0xf9   :  { %v181_v10 = vsub.f32 %v167_v1, %v179_v8  ;;  %v184_v11 = vsel %vm170_vm0, %v182_v9, 0.0 }
  0xfa   :  { %185 = vadd.xlane.f32.xlu1 %v184_v11 }
  0xfb   :  { %v183_v12 = vmul.f32 %v181_v10, %v181_v10 }
  0xfd   :  { %v187_v13 = vsel %vm170_vm0, %v183_v12, 0.0 }
  0xfe   :  { %188 = vadd.xlane.f32.xlu1 %v187_v13 }
 0x183   :  { %v186_v17 = vpop.xlane.xlu1 %185 }
 0x184   :  { %v190_v18 = vmul.f32 0.03125, %v186_v17 }
 0x186   :  { %v192_v19 = vadd.f32 1e-12, %v190_v18 }
 0x187   :  { %v189_v20 = vpop.xlane.xlu1 %188 }
 0x188   :  { %2795 = vrsqrt.f32 %v192_v19  ;;  %v191_v21 = vmul.f32 0.03125, %v189_v20 }
 0x18a   :  { %v193_v22 = vadd.f32 1e-12, %v191_v21 }
 0x18c   :  { %2797 = vrsqrt.f32 %v193_v22 }
 0x195   :  { %v2796_v23 = vpop.eup %2795 }
 0x196   :  { %v196_v24 = vmul.f32 %v2796_v23, %v180_v6 }
 0x198   :  { %v204_v28 = vmul.f32 %v2375_v25, %v196_v24 }
 0x199   :  { %v2798_v26 = vpop.eup %2797 }
 0x19a   :  { %v197_v27 = vmul.f32 %v2798_v26, %v181_v10  ;;  %v3262_v31 = vadd.f32 %v2376_v29, %v204_v28 }
 0x19c   :  { %v205_v30 = vmul.f32 %v2375_v25, %v197_v27 }
 0x19e   :  { %v3264_v32 = vadd.f32 %v2376_v29, %v205_v30 }
 0x1a0   :  { %v216_v33 = vpack.c.bf16 %v3264_v32, %v3262_v31 }
 0x1a2   :  { %2548 = vmatmul.mubr.msk.bf16.vlgmr.msra.gmra.mxu0 %vm170_vm0, %v216_v33 }
 0x1a3   :  { %2559 = vmatprep.mubr.msk.bf16.mxu0 %vm3094_vm1, %v3093_v15 }
 0x262   :  { %v277_v34 = vpop.f32.mrf.mxu0 }
 0x263   :  { %v278_v38 = vadd.f32 %v2377_v35, %v277_v34 }
 0x264   :  { %v2549_v36 = vpop.f32.mrf.mxu0 }
 0x266   :  { %v280_v37 = vpop.f32.mrf.mxu0 }
 0x267   :  { %v281_v39 = vadd.f32 %v2377_v35, %v280_v37 }
 0x268   :  { %v2550_v40 = vpop.f32.mrf.mxu0 }
 0x269   :  { %v3271_v41 = vpack.c.bf16 %v281_v39, %v278_v38  ;;  %v408_v40 = vld [vmem:[%s3658_s6] sm:$0xf] }
 0x26b   :  { %411 = vrot.lane.b32.xlu1 %v3271_v41, %s3095_s30  ;;  %286 = vrot.lane.b32.xlu0 %v3271_v41, %s3096_s2 }
 0x26f   :  { %409 = vrot.lane.b32.xlu1 %v3271_v41, %s3097_s0 }
 0x2dd   :  { %v287_v42 = vpop.permute.xlu0 %286  ;;  %v412_v44 = vpop.permute.xlu1 %411 }
 0x2de   :  { %v293_v43 = vsel %vm288_vm2, %v287_v42, 0  ;;  %v417_v45 = vsel %vm288_vm2, %v412_v44, 0  ;;  %v585_v42 = vsel %vm536_vm4, %v408_v40, 0 }
 0x2df   :  { %2552 = vmatpush3.bf16.xpose.msra.mxu1 %v293_v43  ;;  %v2385_v43 = vld [vmem:[%s3658_s6 + $0x4] sm:$0xf] }
 0x2e0   :  { %2563 = vmatprep.subr.bf16.mxu1 %v3093_v15  ;;  %v538_v44 = vsel %vm536_vm4, %v2385_v43, 0 }
 0x2e1   :  { %v410_v46 = vpop.permute.xlu1 %409 }
 0x2e6   :  { %2554 = vmatmul.mubr.msk.bf16.vlgmr.msra.gmra.mxu1 %vm288_vm2, %v3271_v41 }
 0x2e7   :  { %2564 = vmatpush3.bf16.xpose.msra.mxu1 %v417_v45  ;;  %2565 = vmatprep.mubr.msk.bf16.mxu1 %vm3094_vm1, %v3093_v15 }
 0x2e8   :  { %2575 = vmatprep.subr.bf16.mxu1 %v3093_v15 }
 0x2ee   :  { %2566 = vmatmul.mubr.msk.bf16.vlgmr.msra.gmra.mxu1 %vm288_vm2, %v410_v46 }
 0x2ef   :  { %2577 = vmatprep.mubr.msk.bf16.mxu1 %vm3094_vm1, %v3093_v15  ;;  %2576 = vmatpush3.bf16.msra.mxu1 %v538_v44 }
 0x2f0   :  { %2587 = vmatprep.subr.bf16.mxu1 %v3093_v15 }
 0x3a6   :  { %v329_v48 = vpop.f32.mrf.mxu1 }
 0x3a7   :  { %v330_v49 = vadd.f32 %v329_v48, %v3290_v47 }
 0x3a8   :  { %v2555_v50 = vpop.f32.mrf.mxu1 }
 0x3a9   :  { %v337_v52 = vsel %vm336_vm3, %v330_v49, -inf }
 0x3aa   :  { %338 = vmax.xlane.f32.xlu1 %v337_v52  ;;  %v332_v53 = vpop.f32.mrf.mxu1 }
 0x3ab   :  { %v333_v54 = vadd.f32 %v332_v53, %v3293_v51 }
 0x3ac   :  { %v2556_v55 = vpop.f32.mrf.mxu1 }
 0x3ad   :  { %v340_v56 = vsel %vm336_vm3, %v333_v54, -inf }
 0x3ae   :  { %341 = vmax.xlane.f32.xlu0 %v340_v56  ;;  %v453_v57 = vpop.f32.mrf.mxu1 }
 0x3af   :  { %v454_v58 = vadd.f32 %v453_v57, %v3290_v47 }
 0x3b0   :  { %v2567_v59 = vpop.f32.mrf.mxu1 }
 0x3b1   :  { %v460_v60 = vsel %vm336_vm3, %v454_v58, -inf }
 0x3b2   :  { %461 = vmax.xlane.f32.xlu0 %v460_v60  ;;  %v456_v61 = vpop.f32.mrf.mxu1 }
 0x3b3   :  { %v457_v62 = vadd.f32 %v456_v61, %v3293_v51 }
 0x3b4   :  { %v2568_v63 = vpop.f32.mrf.mxu1 }
 0x3b5   :  { %v463_v0 = vsel %vm336_vm3, %v457_v62, -inf }
 0x3b6   :  { %464 = vmax.xlane.f32.xlu0 %v463_v0 }
 0x433   :  { %v339_v1 = vpop.xlane.xlu1 %338 }
 0x434   :  { %v343_v2 = vsub.f32 %v330_v49, %v339_v1 }
 0x436   :  { %v345_v3 = vmul.f32 1.442695, %v343_v2 }
 0x437   :  { %v342_v4 = vpop.xlane.xlu0 %341 }
 0x438   :  { %2799 = vpow2.f32 %v345_v3  ;;  %v344_v5 = vsub.f32 %v333_v54, %v342_v4 }
 0x43a   :  { %v347_v6 = vmul.f32 1.442695, %v344_v5 }
 0x43b   :  { %v462_v7 = vpop.xlane.xlu0 %461 }
 0x43c   :  { %2801 = vpow2.f32 %v347_v6  ;;  %v466_v8 = vsub.f32 %v454_v58, %v462_v7 }
 0x43e   :  { %v468_v9 = vmul.f32 1.442695, %v466_v8 }
 0x43f   :  { %v465_v10 = vpop.xlane.xlu0 %464 }
 0x440   :  { %2803 = vpow2.f32 %v468_v9  ;;  %v467_v11 = vsub.f32 %v457_v62, %v465_v10 }
 0x442   :  { %v470_v12 = vmul.f32 1.442695, %v467_v11 }
 0x444   :  { %2805 = vpow2.f32 %v470_v12 }
 0x445   :  { %v2800_v13 = vpop.eup %2799 }
 0x446   :  { %v349_v14 = vsel %vm336_vm3, %v2800_v13, 0.0 }
 0x447   :  { %350 = vadd.xlane.f32.xlu1 %v349_v14 }
 0x449   :  { %v2802_v16 = vpop.eup %2801 }
 0x44a   :  { %v352_v17 = vsel %vm336_vm3, %v2802_v16, 0.0 }
 0x44b   :  { %353 = vadd.xlane.f32.xlu0 %v352_v17 }
 0x44d   :  { %v2804_v18 = vpop.eup %2803 }
 0x44e   :  { %v472_v19 = vsel %vm336_vm3, %v2804_v18, 0.0 }
 0x44f   :  { %473 = vadd.xlane.f32.xlu1 %v472_v19 }
 0x451   :  { %v2806_v20 = vpop.eup %2805 }
 0x452   :  { %v475_v21 = vsel %vm336_vm3, %v2806_v20, 0.0 }
 0x453   :  { %476 = vadd.xlane.f32.xlu0 %v475_v21 }
 0x460   :  { %360 = vrot.lane.b32.xlu1 %v3271_v41, %s3098_s23 }
 0x464   :  { %630 = vrot.lane.b32.xlu1 %v3271_v41, %s3099_s24 }
 0x468   :  { %628 = vrot.lane.b32.xlu1 %v3271_v41, %s3100_s25 }
 0x469   :  { %483 = vrot.lane.b32.xlu0 %v3271_v41, %s3101_s29 }
 0x4d0   :  { %v351_v22 = vpop.xlane.xlu1 %350 }
 0x4d1   :  { %2807 = vrcp.f32 %v351_v22 }
 0x4d4   :  { %v354_v23 = vpop.xlane.xlu0 %353 }
 0x4d5   :  { %2809 = vrcp.f32 %v354_v23 }
 0x4d8   :  { %v474_v24 = vpop.xlane.xlu1 %473 }
 0x4d9   :  { %2811 = vrcp.f32 %v474_v24 }
 0x4dc   :  { %v361_v25 = vpop.permute.xlu1 %360  ;;  %v477_v26 = vpop.xlane.xlu0 %476 }
 0x4dd   :  { %2813 = vrcp.f32 %v477_v26  ;;  %2558 = vmatpush3.bf16.msra.mxu0 %v361_v25 }
 0x4de   :  { %2569 = vmatprep.subr.bf16.mxu0 %v3093_v15  ;;  %v2808_v27 = vpop.eup %2807 }
 0x4df   :  { %v357_v29 = vmul.f32 %v2808_v27, %v2800_v13 }
 0x4e0   :  { %v484_v34 = vpop.permute.xlu0 %483  ;;  %v631_v54 = vpop.permute.xlu1 %630 }
 0x4e1   :  { %v636_v58 = vsel %vm288_vm2, %v631_v54, 0 }
 0x4e2   :  { %v2810_v28 = vpop.eup %2809 }
 0x4e3   :  { %v358_v30 = vmul.f32 %v2810_v28, %v2802_v16 }
 0x4e4   :  { %v629_v59 = vpop.permute.xlu1 %628 }
 0x4e5   :  { %v359_v33 = vpack.c.bf16 %v358_v30, %v357_v29 }
 0x4e6   :  { %v2812_v35 = vpop.eup %2811 }
 0x4e7   :  { %2560 = vmatmul.mubr.msk.bf16.vlgmr.msra.gmra.mxu0 %vm336_vm3, %v359_v33  ;;  %v480_v37 = vmul.f32 %v2812_v35, %v2804_v18 }
 0x4e8   :  { %2570 = vmatpush3.bf16.msra.mxu0 %v484_v34  ;;  %2571 = vmatprep.mubr.msk.bf16.mxu0 %vm3094_vm1, %v3093_v15 }
 0x4e9   :  { %2581 = vmatprep.subr.bf16.mxu0 %v3093_v15 }
 0x4ea   :  { %v2814_v36 = vpop.eup %2813 }
 0x4eb   :  { %v481_v38 = vmul.f32 %v2814_v36, %v2806_v20 }
 0x4ed   :  { %v482_v39 = vpack.c.bf16 %v481_v38, %v480_v37  ;;  %v2390_v38 = vld [vmem:[%s3658_s6 + $0x8] sm:$0xf] }
 0x4ef   :  { %2572 = vmatmul.mubr.msk.bf16.vlgmr.msra.gmra.mxu0 %vm336_vm3, %v482_v39  ;;  %v756_v39 = vsel %vm536_vm4, %v2390_v38, 0 }
 0x4f0   :  { %2583 = vmatprep.mubr.msk.bf16.mxu0 %vm3094_vm1, %v3093_v15  ;;  %2582 = vmatpush3.bf16.msra.mxu0 %v585_v42 }
 0x4f1   :  { %2593 = vmatprep.subr.bf16.mxu0 %v3093_v15 }
 0x5a7   :  { %v400_v45 = vpop.f32.mrf.mxu0 }
 0x5a9   :  { %v2561_v46 = vpop.f32.mrf.mxu0 }
 0x5ab   :  { %v403_v48 = vpop.f32.mrf.mxu0 }
 0x5ac   :  { %v407_v49 = vpack.c.bf16 %v403_v48, %v400_v45 }
 0x5ad   :  { %v2562_v50 = vpop.f32.mrf.mxu0 }
 0x5ae   :  { %2584 = vmatmul.mubr.msk.bf16.vlgmr.msra.gmra.mxu0 %vm288_vm2, %v407_v49 }
 0x5af   :  { %v523_v52 = vpop.f32.mrf.mxu0  ;;  %2595 = vmatprep.mubr.msk.bf16.mxu0 %vm3094_vm1, %v3093_v15 }
 0x5b1   :  { %v2573_v53 = vpop.f32.mrf.mxu0 }
 0x5b3   :  { %v526_v55 = vpop.f32.mrf.mxu0 }
 0x5b4   :  { %v530_v56 = vpack.c.bf16 %v526_v55, %v523_v52 }
 0x5b5   :  { %v2574_v57 = vpop.f32.mrf.mxu0 }
 0x5b6   :  { %2578 = vmatmul.mubr.msk.bf16.vlgmr.msra.gmra.mxu1 %vm288_vm2, %v530_v56 }
 0x5b7   :  { %2588 = vmatpush3.bf16.xpose.msra.mxu1 %v636_v58  ;;  %2589 = vmatprep.mubr.msk.bf16.mxu1 %vm3094_vm1, %v3093_v15 }
 0x5b8   :  { %2599 = vmatprep.subr.bf16.mxu1 %v3093_v15 }
 0x5be   :  { %2590 = vmatmul.mubr.msk.bf16.vlgmr.msra.gmra.mxu1 %vm288_vm2, %v629_v59 }
 0x5bf   :  { %2601 = vmatprep.mubr.msk.bf16.mxu1 %vm3094_vm1, %v3093_v15  ;;  %2600 = vmatpush3.bf16.msra.mxu1 %v756_v39 }
 0x5c0   :  { %2611 = vmatprep.subr.bf16.mxu1 %v3093_v15 }
 0x66e   :  { %v621_v60 = vpop.f32.mrf.mxu0 }
 0x670   :  { %v2585_v61 = vpop.f32.mrf.mxu0 }
 0x672   :  { %v624_v62 = vpop.f32.mrf.mxu0 }
 0x674   :  { %v2586_v63 = vpop.f32.mrf.mxu0 }
 0x676   :  { %v574_v0 = vpop.f32.mrf.mxu1 }
 0x677   :  { %v3343_v1 = vadd.f32 %v621_v60, %v574_v0 }
 0x678   :  { %v2579_v2 = vpop.f32.mrf.mxu1 }
 0x67a   :  { %v577_v3 = vpop.f32.mrf.mxu1 }
 0x67b   :  { %v3345_v4 = vadd.f32 %v624_v62, %v577_v3 }
 0x67c   :  { %v2580_v5 = vpop.f32.mrf.mxu1 }
 0x67e   :  { %v672_v6 = vpop.f32.mrf.mxu1 }
 0x67f   :  { %v673_v7 = vadd.f32 %v672_v6, %v3290_v47 }
 0x680   :  { %v2591_v8 = vpop.f32.mrf.mxu1 }
 0x681   :  { %v679_v9 = vsel %vm336_vm3, %v673_v7, -inf }
 0x682   :  { %680 = vmax.xlane.f32.xlu1 %v679_v9  ;;  %v675_v10 = vpop.f32.mrf.mxu1 }
 0x683   :  { %v676_v11 = vadd.f32 %v675_v10, %v3293_v51 }
 0x684   :  { %v2592_v12 = vpop.f32.mrf.mxu1 }
 0x685   :  { %v682_v13 = vsel %vm336_vm3, %v676_v11, -inf }
 0x686   :  { %683 = vmax.xlane.f32.xlu0 %v682_v13 }
 0x693   :  { %702 = vrot.lane.b32.xlu1 %v3271_v41, %s3102_s5 }
 0x697   :  { %801 = vrot.lane.b32.xlu1 %v3271_v41, %s3103_s20 }
 0x70b   :  { %v681_v14 = vpop.xlane.xlu1 %680 }
 0x70c   :  { %v685_v16 = vsub.f32 %v673_v7, %v681_v14 }
 0x70e   :  { %v687_v17 = vmul.f32 1.442695, %v685_v16 }
 0x70f   :  { %v703_v18 = vpop.permute.xlu1 %702  ;;  %v684_v19 = vpop.xlane.xlu0 %683 }
 0x710   :  { %2815 = vpow2.f32 %v687_v17  ;;  %v686_v20 = vsub.f32 %v676_v11, %v684_v19  ;;  %2594 = vmatpush3.bf16.msra.mxu0 %v703_v18 }
 0x711   :  { %2605 = vmatprep.subr.bf16.mxu0 %v3093_v15 }
 0x712   :  { %v689_v21 = vmul.f32 1.442695, %v686_v20 }
 0x713   :  { %v802_v37 = vpop.permute.xlu1 %801 }
 0x714   :  { %2817 = vpow2.f32 %v689_v21 }
 0x71d   :  { %v2816_v22 = vpop.eup %2815 }
 0x71e   :  { %v691_v23 = vsel %vm336_vm3, %v2816_v22, 0.0 }
 0x71f   :  { %692 = vadd.xlane.f32.xlu0 %v691_v23 }
 0x721   :  { %v2818_v24 = vpop.eup %2817 }
 0x722   :  { %v694_v25 = vsel %vm336_vm3, %v2818_v24, 0.0 }
 0x723   :  { %695 = vadd.xlane.f32.xlu0 %v694_v25 }
 0x739   :  { %803 = vrot.lane.b32.xlu0 %v3271_v41, %s3104_s3 }
 0x7a8   :  { %v693_v26 = vpop.xlane.xlu0 %692 }
 0x7a9   :  { %2819 = vrcp.f32 %v693_v26  ;;  %v2396_v26 = vld [vmem:[#allocation11] ss:$0 sm:$0xff] }
 0x7ac   :  { %v696_v27 = vpop.xlane.xlu0 %695 }
 0x7ad   :  { %2821 = vrcp.f32 %v696_v27 }
 0x7b0   :  { %v804_v34 = vpop.permute.xlu0 %803 }
 0x7b1   :  { %v809_v36 = vsel %vm288_vm2, %v804_v34, 0 }
 0x7b6   :  { %v2820_v28 = vpop.eup %2819 }
 0x7b7   :  { %v699_v30 = vmul.f32 %v2820_v28, %v2816_v22 }
 0x7ba   :  { %v2822_v29 = vpop.eup %2821 }
 0x7bb   :  { %v700_v33 = vmul.f32 %v2822_v29, %v2818_v24 }
 0x7bd   :  { %v701_v35 = vpack.c.bf16 %v700_v33, %v699_v30 }
 0x7bf   :  { %2596 = vmatmul.mubr.msk.bf16.vlgmr.msra.gmra.mxu0 %vm336_vm3, %v701_v35 }
 0x7c0   :  { %2606 = vmatpush3.bf16.xpose.msra.mxu0 %v809_v36  ;;  %2607 = vmatprep.mubr.msk.bf16.mxu0 %vm3094_vm1, %v3093_v15 }
 0x7c1   :  { %2617 = vmatprep.subr.bf16.mxu0 %v3093_v15 }
 0x7c7   :  { %2608 = vmatmul.mubr.msk.bf16.vlgmr.msra.gmra.mxu0 %vm288_vm2, %v802_v37 }
 0x7c8   :  { %2619 = vmatprep.mubr.msk.bf16.mxu0 %vm3094_vm1, %v3093_v15 }
 0x87f   :  { %v742_v40 = vpop.f32.mrf.mxu0 }
 0x881   :  { %v2597_v42 = vpop.f32.mrf.mxu0 }
 0x883   :  { %v745_v43 = vpop.f32.mrf.mxu0 }
 0x884   :  { %v749_v44 = vpack.c.bf16 %v745_v43, %v742_v40 }
 0x885   :  { %v2598_v45 = vpop.f32.mrf.mxu0 }
 0x886   :  { %2602 = vmatmul.mubr.msk.bf16.vlgmr.msra.gmra.mxu1 %vm288_vm2, %v749_v44 }
 0x887   :  { %v845_v46 = vpop.f32.mrf.mxu0  ;;  %2613 = vmatprep.mubr.msk.bf16.mxu1 %vm3094_vm1, %v3093_v15 }
 0x888   :  { %v846_v48 = vadd.f32 %v845_v46, %v3290_v47 }
 0x889   :  { %v2609_v49 = vpop.f32.mrf.mxu0 }
 0x88a   :  { %v852_v50 = vsel %vm336_vm3, %v846_v48, -inf  ;;  %v2780_v49 = vld [vmem:[%s3662_s10] sm:$0xff]  }
 0x88b   :  { %853 = vmax.xlane.f32.xlu1 %v852_v50  ;;  %v848_v52 = vpop.f32.mrf.mxu0 }
 0x88c   :  { %v849_v53 = vadd.f32 %v848_v52, %v3293_v51 }
 0x88d   :  { %v2610_v54 = vpop.f32.mrf.mxu0 }
 0x88e   :  { %v855_v55 = vsel %vm336_vm3, %v849_v53, -inf }
 0x88f   :  { %856 = vmax.xlane.f32.xlu0 %v855_v55 }
 0x914   :  { %v854_v56 = vpop.xlane.xlu1 %853 }
 0x915   :  { %v858_v57 = vsub.f32 %v846_v48, %v854_v56  ;;  %v2779_v48 = vld [vmem:[%s3662_s10 + $0x8] sm:$0xff]  }
 0x917   :  { %v860_v58 = vmul.f32 1.442695, %v858_v57 }
 0x918   :  { %v857_v59 = vpop.xlane.xlu0 %856 }
 0x919   :  { %2823 = vpow2.f32 %v860_v58  ;;  %v859_v60 = vsub.f32 %v849_v53, %v857_v59  ;;  %v2397_v59 = vld [vmem:[#allocation13] ss:$0 sm:$0xff] }
 0x91b   :  { %v862_v61 = vmul.f32 1.442695, %v859_v60 }
 0x91d   :  { %2825 = vpow2.f32 %v862_v61 }
 0x926   :  { %v2824_v62 = vpop.eup %2823 }
 0x927   :  { %v864_v63 = vsel %vm336_vm3, %v2824_v62, 0.0 }
 0x928   :  { %865 = vadd.xlane.f32.xlu0 %v864_v63  ;;  %v2398_v63 = vld [vmem:[#allocation14] ss:$0 sm:$0xff] }
 0x92a   :  { %v2826_v0 = vpop.eup %2825 }
 0x92b   :  { %v867_v2 = vsel %vm336_vm3, %v2826_v0, 0.0 }
 0x92c   :  { %868 = vadd.xlane.f32.xlu1 %v867_v2 }
 0x93e   :  { %875 = vrot.lane.b32.xlu0 %v3271_v41, %s3105_s28 }
 0x946   :  { %v792_v3 = vpop.f32.mrf.mxu1 }
 0x947   :  { %v799_v5 = vadd.f32 %v792_v3, %v3343_v1  ;;  %v2394_v1 = vld [vmem:[%s3658_s6 + $0xc] sm:$0xf] }
 0x948   :  { %v2603_v6 = vpop.f32.mrf.mxu1 }
 0x949   :  { %v2781_v6 = vld [vmem:[%s3664_s12 + $0x18] sm:$0xff]  }
 0x94a   :  { %v795_v7 = vpop.f32.mrf.mxu1 }
 0x94b   :  { %v800_v8 = vadd.f32 %v795_v7, %v3345_v4  ;;  %v929_v4 = vsel %vm536_vm4, %v2394_v1, 0  ;;  %v2782_v7 = vld [vmem:[%s3664_s12 + $0x10] sm:$0xff]  }
 0x94c   :  { %v2604_v9 = vpop.f32.mrf.mxu1  ;;  %2618 = vmatpush3.bf16.msra.mxu0 %v929_v4 }
 0x94d   :  { %2631 = vmatprep.subr.bf16.mxu0 %v3093_v15  ;;  %v2784_v9 = vld [vmem:[%s3664_s12] sm:$0xff]  }
 0x9b1   :  { %v866_v10 = vpop.xlane.xlu0 %865 }
 0x9b2   :  { %2827 = vrcp.f32 %v866_v10  ;;  %v2399_v10 = vld [vmem:[%s3663_s11] ss:$0 sm:$0xff] }
 0x9b5   :  { %v869_v11 = vpop.xlane.xlu1 %868  ;;  %v876_v12 = vpop.permute.xlu0 %875 }
 0x9b6   :  { %2829 = vrcp.f32 %v869_v11  ;;  %2612 = vmatpush3.bf16.msra.mxu1 %v876_v12 }
 0x9b7   :  { %2623 = vmatprep.subr.bf16.mxu1 %v3093_v15 }
 0x9bf   :  { %v2828_v13 = vpop.eup %2827 }
 0x9c0   :  { %v872_v16 = vmul.f32 %v2828_v13, %v2824_v62 }
 0x9c3   :  { %v2830_v14 = vpop.eup %2829 }
 0x9c4   :  { %v873_v41 = vmul.f32 %v2830_v14, %v2826_v0 }
 0x9c6   :  { %v874_v17 = vpack.c.bf16 %v873_v41, %v872_v16 }
 0x9c8   :  { %2614 = vmatmul.mubr.msk.bf16.vlgmr.msra.gmra.mxu1 %vm336_vm3, %v874_v17 }
 0x9c9   :  { %2627 = vmatprep.mubr.msk.bf16.mxu1 %vm3094_vm1, %v3093_v15  ;;  %2624 = vmatpush3.bf16.msra.mxu1 %v2779_v48 }
 0x9ca   :  { %2625 = vmatprep.subr.bf16.mxu1 %v3093_v15 }
 0x9cd   :  { %2626 = vmatpush3.bf16.msra.mxu1 %v2780_v49 }
 0x9ce   :  { %2643 = vmatprep.subr.bf16.mxu1 %v3093_v15 }
 0xa88   :  { %v915_v18 = vpop.f32.mrf.mxu1 }
 0xa8a   :  { %v2615_v19 = vpop.f32.mrf.mxu1 }
 0xa8c   :  { %v918_v20 = vpop.f32.mrf.mxu1 }
 0xa8d   :  { %v922_v21 = vpack.c.bf16 %v918_v20, %v915_v18 }
 0xa8e   :  { %v2616_v22 = vpop.f32.mrf.mxu1 }
 0xa8f   :  { %2620 = vmatmul.mubr.msk.bf16.vlgmr.msra.gmra.mxu0 %vm288_vm2, %v922_v21 }
 0xa90   :  { %2639 = vmatprep.mubr.msk.bf16.mxu0 %vm3094_vm1, %v3093_v15  ;;  %2632 = vmatpush3.bf16.msra.mxu0 %v2781_v6  ;;  %v2409_v6 = vld [vmem:[%s3666_s14] ss:$0 sm:$0xff] }
 0xa91   :  { %2633 = vmatprep.subr.bf16.mxu0 %v3093_v15 }
 0xa94   :  { %2634 = vmatpush3.bf16.msra.mxu0 %v2782_v7 }
 0xa95   :  { %2635 = vmatprep.subr.bf16.mxu0 %v3093_v15 }
 0xb4f   :  { %v965_v23 = vpop.f32.mrf.mxu0 }
 0xb50   :  { %v972_v24 = vadd.f32 %v965_v23, %v799_v5 }
 0xb51   :  { %v2621_v25 = vpop.f32.mrf.mxu0 }
 0xb52   :  { %v974_v27 = vadd.f32 %v972_v24, %v3262_v31 }
 0xb53   :  { %v968_v28 = vpop.f32.mrf.mxu0 }
 0xb54   :  { %v973_v29 = vadd.f32 %v968_v28, %v800_v8  ;;  %v983_v30 = vadd.f32 %v2396_v26, %v974_v27  ;;  %v2783_v8 = vld [vmem:[%s3664_s12 + $0x8] sm:$0xff]  }
 0xb55   :  { %v2622_v33 = vpop.f32.mrf.mxu0  ;;  %2636 = vmatpush3.bf16.msra.mxu0 %v2783_v8 }
 0xb56   :  { %v975_v34 = vadd.f32 %v973_v29, %v3264_v32  ;;  %v987_v35 = vsel %vm170_vm0, %v983_v30, 0.0  ;;  %2637 = vmatprep.subr.bf16.mxu0 %v3093_v15 }
 0xb57   :  { %988 = vadd.xlane.f32.xlu1 %v987_v35 }
 0xb58   :  { %v984_v36 = vadd.f32 %v2396_v26, %v975_v34 }
 0xb59   :  { %2638 = vmatpush3.bf16.msra.mxu0 %v2784_v9 }
 0xb5a   :  { %v990_v37 = vsel %vm170_vm0, %v984_v36, 0.0  ;;  %2657 = vmatprep.subr.bf16.mxu0 %v3093_v15 }
 0xb5b   :  { %991 = vadd.xlane.f32.xlu1 %v990_v37 }
 0xbe0   :  { %v989_v38 = vpop.xlane.xlu1 %988 }
 0xbe1   :  { %v993_v39 = vmul.f32 0.03125, %v989_v38 }
 0xbe3   :  { %v995_v40 = vsub.f32 %v983_v30, %v993_v39 }
 0xbe4   :  { %v992_v42 = vpop.xlane.xlu1 %991 }
 0xbe5   :  { %v994_v43 = vmul.f32 0.03125, %v992_v42  ;;  %v997_v44 = vmul.f32 %v995_v40, %v995_v40 }
 0xbe7   :  { %v996_v31 = vsub.f32 %v984_v36, %v994_v43  ;;  %v999_v45 = vsel %vm170_vm0, %v997_v44, 0.0  ;;  %v2403_v36 = vld [vmem:[%s3665_s13] ss:$0 sm:$0xff] }
 0xbe8   :  { %1000 = vadd.xlane.f32.xlu1 %v999_v45 }
 0xbe9   :  { %v998_v46 = vmul.f32 %v996_v31, %v996_v31 }
 0xbeb   :  { %v1002_v32 = vsel %vm170_vm0, %v998_v46, 0.0 }
 0xbec   :  { %1003 = vadd.xlane.f32.xlu1 %v1002_v32 }
 0xc71   :  { %v1001_v50 = vpop.xlane.xlu1 %1000 }
 0xc72   :  { %v1005_v52 = vmul.f32 0.03125, %v1001_v50 }
 0xc74   :  { %v1007_v53 = vadd.f32 1e-12, %v1005_v52 }
 0xc75   :  { %v1004_v54 = vpop.xlane.xlu1 %1003 }
 0xc76   :  { %2831 = vrsqrt.f32 %v1007_v53  ;;  %v1006_v55 = vmul.f32 0.03125, %v1004_v54 }
 0xc78   :  { %v1008_v56 = vadd.f32 1e-12, %v1006_v55 }
 0xc7a   :  { %2833 = vrsqrt.f32 %v1008_v56 }
 0xc83   :  { %v2832_v57 = vpop.eup %2831 }
 0xc84   :  { %v1011_v58 = vmul.f32 %v2832_v57, %v995_v40 }
 0xc86   :  { %v1019_v62 = vmul.f32 %v2397_v59, %v1011_v58  ;;  %v2785_v58 = vld [vmem:[%s3656_s4 + $0x18] sm:$0xff]  }
 0xc87   :  { %v2834_v60 = vpop.eup %2833 }
 0xc88   :  { %v1012_v61 = vmul.f32 %v2834_v60, %v996_v31  ;;  %v1027_v2 = vadd.f32 %v2398_v63, %v1019_v62 }
 0xc8a   :  { %v1020_v0 = vmul.f32 %v2397_v59, %v1012_v61  ;;  %v2786_v59 = vld [vmem:[%s3656_s4 + $0x10] sm:$0xff]  }
 0xc8c   :  { %v1028_v3 = vadd.f32 %v2398_v63, %v1020_v0 }
 0xc8e   :  { %v1029_v5 = vpack.c.bf16 %v1028_v3, %v1027_v2 }
 0xc90   :  { %2628 = vmatmul.mubr.msk.bf16.vlgmr.msra.gmra.mxu1 %vm170_vm0, %v1029_v5 }
 0xc91   :  { %2647 = vmatprep.mubr.msk.bf16.mxu1 %vm3094_vm1, %v3093_v15  ;;  %2644 = vmatpush3.bf16.msra.mxu1 %v2785_v58 }
 0xc92   :  { %2645 = vmatprep.subr.bf16.mxu1 %v3093_v15 }
 0xc95   :  { %2646 = vmatpush3.bf16.msra.mxu1 %v2786_v59 }
 0xc96   :  { %2651 = vmatprep.subr.bf16.mxu1 %v3093_v15 }
 0xd50   :  { %v1090_v11 = vpop.f32.mrf.mxu1 }
 0xd51   :  { %v1091_v12 = vadd.f32 %v2399_v10, %v1090_v11 }
 0xd52   :  { %v2629_v13 = vpop.f32.mrf.mxu1 }
 0xd53   :  { %v1099_v14 = vmul.f32 %v1091_v12, %v1091_v12  ;;  %v1097_v28 = vmul.f32 0.5, %v1091_v12 }
 0xd54   :  { %v1093_v16 = vpop.f32.mrf.mxu1 }
 0xd55   :  { %v1101_v41 = vmul.f32 %v1099_v14, %v1091_v12  ;;  %v1094_v17 = vadd.f32 %v2399_v10, %v1093_v16  ;;  %v2410_v10 = vld [vmem:[%s3667_s15] ss:$0 sm:$0xff] }
 0xd56   :  { %v2630_v1 = vpop.f32.mrf.mxu1 }
 0xd57   :  { %v1103_v4 = vmul.f32 0.044715, %v1101_v41  ;;  %v1100_v18 = vmul.f32 %v1094_v17, %v1094_v17  ;;  %v1098_v29 = vmul.f32 0.5, %v1094_v17  ;;  %v2415_v41 = vld [vmem:[#allocation10 + $0x1] ss:$0 sm:$0xff] }
 0xd59   :  { %v1105_v19 = vadd.f32 %v1103_v4, %v1091_v12  ;;  %v1102_v20 = vmul.f32 %v1100_v18, %v1094_v17 }
 0xd5b   :  { %v1107_v21 = vmul.f32 0.7978846, %v1105_v19  ;;  %v1104_v22 = vmul.f32 0.044715, %v1102_v20 }
 0xd5d   :  { %2835 = vtanh.f32 %v1107_v21  ;;  %v1106_v23 = vadd.f32 %v1104_v22, %v1094_v17 }
 0xd5f   :  { %v1108_v24 = vmul.f32 0.7978846, %v1106_v23 }
 0xd61   :  { %2837 = vtanh.f32 %v1108_v24 }
 0xd6a   :  { %v2836_v25 = vpop.eup %2835 }
 0xd6b   :  { %v1111_v26 = vadd.f32 1.0, %v2836_v25 }
 0xd6d   :  { %v1113_v33 = vmul.f32 %v1111_v26, %v1097_v28 }
 0xd6e   :  { %v2838_v27 = vpop.eup %2837 }
 0xd6f   :  { %v1112_v30 = vadd.f32 1.0, %v2838_v27 }
 0xd71   :  { %v1114_v34 = vmul.f32 %v1112_v30, %v1098_v29 }
 0xd73   :  { %v1115_v35 = vpack.c.bf16 %v1114_v34, %v1113_v33 }
 0xd75   :  { %2640 = vmatmul.mubr.msk.bf16.vlgmr.msra.gmra.mxu0 %vm1155_vm5, %v1115_v35 }
 0xd76   :  { %2659 = vmatprep.mubr.msk.bf16.mxu0 %vm3094_vm1, %v3093_v15 }
 0xe35   :  { %v1193_v37 = vpop.f32.mrf.mxu0 }
 0xe36   :  { %v1194_v38 = vadd.f32 %v2403_v36, %v1193_v37 }
 0xe37   :  { %v2641_v39 = vpop.f32.mrf.mxu0 }
 0xe38   :  { %v1200_v40 = vadd.f32 %v1194_v38, %v1027_v2 }
 0xe39   :  { %v1196_v42 = vpop.f32.mrf.mxu0 }
 0xe3a   :  { %v1197_v43 = vadd.f32 %v2403_v36, %v1196_v42  ;;  %v1204_v44 = vsel %vm170_vm0, %v1200_v40, 0.0 }
 0xe3b   :  { %1205 = vadd.xlane.f32.xlu1 %v1204_v44  ;;  %v2642_v31 = vpop.f32.mrf.mxu0 }
 0xe3c   :  { %v1201_v45 = vadd.f32 %v1197_v43, %v1028_v3 }
 0xe3e   :  { %v1207_v46 = vsel %vm170_vm0, %v1201_v45, 0.0 }
 0xe3f   :  { %1208 = vadd.xlane.f32.xlu1 %v1207_v46 }
 0xec4   :  { %v1206_v32 = vpop.xlane.xlu1 %1205 }
 0xec5   :  { %v1210_v48 = vmul.f32 0.03125, %v1206_v32 }
 0xec7   :  { %v1212_v49 = vsub.f32 %v1200_v40, %v1210_v48 }
 0xec8   :  { %v1209_v50 = vpop.xlane.xlu1 %1208 }
 0xec9   :  { %v1211_v52 = vmul.f32 0.03125, %v1209_v50  ;;  %v1214_v53 = vmul.f32 %v1212_v49, %v1212_v49 }
 0xecb   :  { %v1213_v54 = vsub.f32 %v1201_v45, %v1211_v52  ;;  %v1216_v55 = vsel %vm170_vm0, %v1214_v53, 0.0 }
 0xecc   :  { %1217 = vadd.xlane.f32.xlu0 %v1216_v55 }
 0xecd   :  { %v1215_v56 = vmul.f32 %v1213_v54, %v1213_v54 }
 0xecf   :  { %v1219_v57 = vsel %vm170_vm0, %v1215_v56, 0.0 }
 0xed0   :  { %1220 = vadd.xlane.f32.xlu1 %v1219_v57 }
 0xf55   :  { %v1218_v60 = vpop.xlane.xlu0 %1217 }
 0xf56   :  { %v1222_v61 = vmul.f32 0.03125, %v1218_v60 }
 0xf58   :  { %v1224_v62 = vadd.f32 1e-12, %v1222_v61 }
 0xf59   :  { %v1221_v63 = vpop.xlane.xlu1 %1220 }
 0xf5a   :  { %2839 = vrsqrt.f32 %v1224_v62  ;;  %v1223_v0 = vmul.f32 0.03125, %v1221_v63 }
 0xf5c   :  { %v1225_v2 = vadd.f32 1e-12, %v1223_v0 }
 0xf5e   :  { %2841 = vrsqrt.f32 %v1225_v2 }
 0xf67   :  { %v2840_v3 = vpop.eup %2839 }
 0xf68   :  { %v1228_v5 = vmul.f32 %v2840_v3, %v1212_v49 }
 0xf6a   :  { %v1236_v9 = vmul.f32 %v2409_v6, %v1228_v5 }
 0xf6b   :  { %v2842_v7 = vpop.eup %2841 }
 0xf6c   :  { %v1229_v8 = vmul.f32 %v2842_v7, %v1213_v54  ;;  %v3458_v12 = vadd.f32 %v2410_v10, %v1236_v9 }
 0xf6e   :  { %v1237_v11 = vmul.f32 %v2409_v6, %v1229_v8 }
 0xf70   :  { %v3460_v13 = vadd.f32 %v2410_v10, %v1237_v11 }
 0xf72   :  { %v1246_v14 = vpack.c.bf16 %v3460_v13, %v3458_v12 }
 0xf74   :  { %2648 = vmatmul.mubr.msk.bf16.vlgmr.msra.gmra.mxu1 %vm170_vm0, %v1246_v14 }
 0xf75   :  { %2653 = vmatprep.mubr.msk.bf16.mxu1 %vm3094_vm1, %v3093_v15 }
0x1034   :  { %v1309_v16 = vpop.f32.mrf.mxu1 }
0x1035   :  { %v1310_v4 = vadd.f32 %v2415_v41, %v1309_v16 }
0x1036   :  { %v2649_v17 = vpop.f32.mrf.mxu1 }
0x1038   :  { %v1312_v1 = vpop.f32.mrf.mxu1 }
0x1039   :  { %v1313_v18 = vadd.f32 %v2415_v41, %v1312_v1 }
0x103a   :  { %v2650_v19 = vpop.f32.mrf.mxu1 }
0x103b   :  { %v3467_v20 = vpack.c.bf16 %v1313_v18, %v1310_v4  ;;  %v2421_v4 = vld [vmem:[%s3658_s6 + $0x10] sm:$0xf]  ;;  %v2424_v19 = vld [vmem:[%s3658_s6 + $0x14] sm:$0xf] }
0x103c   :  { %v1615_v18 = vsel %vm536_vm4, %v2421_v4, 0 }
0x103d   :  { %1318 = vrot.lane.b32.xlu1 %v3467_v20, %s3096_s2 }
0x1041   :  { %1442 = vrot.lane.b32.xlu1 %v3467_v20, %s3095_s30 }
0x1045   :  { %1440 = vrot.lane.b32.xlu1 %v3467_v20, %s3097_s0 }
0x10af   :  { %v1319_v21 = vpop.permute.xlu1 %1318 }
0x10b0   :  { %v1324_v22 = vsel %vm288_vm2, %v1319_v21, 0  ;;  %v1568_v21 = vsel %vm536_vm4, %v2424_v19, 0 }
0x10b1   :  { %2652 = vmatpush3.bf16.xpose.msra.mxu1 %v1324_v22 }
0x10b2   :  { %2663 = vmatprep.subr.bf16.mxu1 %v3093_v15 }
0x10b3   :  { %v1443_v23 = vpop.permute.xlu1 %1442 }
0x10b4   :  { %v1448_v24 = vsel %vm288_vm2, %v1443_v23, 0 }
0x10b7   :  { %v1441_v25 = vpop.permute.xlu1 %1440 }
0x10b8   :  { %2654 = vmatmul.mubr.msk.bf16.vlgmr.msra.gmra.mxu1 %vm288_vm2, %v3467_v20 }
0x10b9   :  { %2664 = vmatpush3.bf16.xpose.msra.mxu1 %v1448_v24  ;;  %2665 = vmatprep.mubr.msk.bf16.mxu1 %vm3094_vm1, %v3093_v15 }
0x10ba   :  { %2675 = vmatprep.subr.bf16.mxu1 %v3093_v15 }
0x10c0   :  { %2666 = vmatmul.mubr.msk.bf16.vlgmr.msra.gmra.mxu1 %vm288_vm2, %v1441_v25 }
0x10c1   :  { %2677 = vmatprep.mubr.msk.bf16.mxu1 %vm3094_vm1, %v3093_v15  ;;  %2676 = vmatpush3.bf16.msra.mxu1 %v1568_v21 }
0x10c2   :  { %2687 = vmatprep.subr.bf16.mxu1 %v3093_v15 }
0x1178   :  { %v1360_v26 = vpop.f32.mrf.mxu1 }
0x1179   :  { %v1361_v27 = vadd.f32 %v1360_v26, %v3290_v47 }
0x117a   :  { %v2655_v28 = vpop.f32.mrf.mxu1 }
0x117b   :  { %v1367_v29 = vsel %vm336_vm3, %v1361_v27, -inf }
0x117c   :  { %1368 = vmax.xlane.f32.xlu0 %v1367_v29  ;;  %v1363_v30 = vpop.f32.mrf.mxu1 }
0x117d   :  { %v1364_v33 = vadd.f32 %v1363_v30, %v3293_v51 }
0x117e   :  { %v2656_v34 = vpop.f32.mrf.mxu1 }
0x117f   :  { %v1370_v35 = vsel %vm336_vm3, %v1364_v33, -inf }
0x1180   :  { %1371 = vmax.xlane.f32.xlu1 %v1370_v35  ;;  %v1484_v36 = vpop.f32.mrf.mxu1 }
0x1181   :  { %v1485_v37 = vadd.f32 %v1484_v36, %v3290_v47 }
0x1182   :  { %v2667_v38 = vpop.f32.mrf.mxu1 }
0x1183   :  { %v1491_v39 = vsel %vm336_vm3, %v1485_v37, -inf }
0x1184   :  { %1492 = vmax.xlane.f32.xlu0 %v1491_v39  ;;  %v1487_v40 = vpop.f32.mrf.mxu1 }
0x1185   :  { %v1488_v42 = vadd.f32 %v1487_v40, %v3293_v51 }
0x1186   :  { %v2668_v43 = vpop.f32.mrf.mxu1 }
0x1187   :  { %v1494_v44 = vsel %vm336_vm3, %v1488_v42, -inf }
0x1188   :  { %1495 = vmax.xlane.f32.xlu0 %v1494_v44 }
0x1191   :  { %1514 = vrot.lane.b32.xlu1 %v3467_v20, %s3101_s29 }
0x1195   :  { %1658 = vrot.lane.b32.xlu1 %v3467_v20, %s3100_s25 }
0x1205   :  { %v1369_v31 = vpop.xlane.xlu0 %1368 }
0x1206   :  { %v1373_v45 = vsub.f32 %v1361_v27, %v1369_v31 }
0x1208   :  { %v1375_v47 = vmul.f32 1.442695, %v1373_v45 }
0x1209   :  { %v1372_v46 = vpop.xlane.xlu1 %1371 }
0x120a   :  { %2843 = vpow2.f32 %v1375_v47  ;;  %v1374_v32 = vsub.f32 %v1364_v33, %v1372_v46 }
0x120c   :  { %v1377_v48 = vmul.f32 1.442695, %v1374_v32  ;;  %v2887_v32 = vld [vmem:[#allocation5] sm:$0xff] }
0x120d   :  { %v1493_v49 = vpop.xlane.xlu0 %1492  ;;  %v1515_v11 = vpop.permute.xlu1 %1514 }
0x120e   :  { %2845 = vpow2.f32 %v1377_v48  ;;  %v1497_v51 = vsub.f32 %v1485_v37, %v1493_v49 }
0x1210   :  { %v1499_v50 = vmul.f32 1.442695, %v1497_v51 }
0x1211   :  { %v1496_v52 = vpop.xlane.xlu0 %1495  ;;  %v1659_v36 = vpop.permute.xlu1 %1658 }
0x1212   :  { %2847 = vpow2.f32 %v1499_v50  ;;  %v1498_v53 = vsub.f32 %v1488_v42, %v1496_v52  ;;  %v2888_v52 = vld [vmem:[#allocation5 + $0x8] sm:$0xff] }
0x1214   :  { %v1501_v54 = vmul.f32 1.442695, %v1498_v53 }
0x1216   :  { %2849 = vpow2.f32 %v1501_v54 }
0x1217   :  { %v2844_v55 = vpop.eup %2843 }
0x1218   :  { %v1379_v56 = vsel %vm336_vm3, %v2844_v55, 0.0 }
0x1219   :  { %1380 = vadd.xlane.f32.xlu0 %v1379_v56 }
0x121b   :  { %v2846_v57 = vpop.eup %2845 }
0x121c   :  { %v1382_v58 = vsel %vm336_vm3, %v2846_v57, 0.0 }
0x121d   :  { %1383 = vadd.xlane.f32.xlu0 %v1382_v58 }
0x121f   :  { %v2848_v59 = vpop.eup %2847 }
0x1220   :  { %v1503_v60 = vsel %vm336_vm3, %v2848_v59, 0.0 }
0x1221   :  { %1504 = vadd.xlane.f32.xlu0 %v1503_v60 }
0x1223   :  { %v2850_v61 = vpop.eup %2849 }
0x1224   :  { %v1506_v62 = vsel %vm336_vm3, %v2850_v61, 0.0 }
0x1225   :  { %1507 = vadd.xlane.f32.xlu0 %v1506_v62 }
0x123b   :  { %1390 = vrot.lane.b32.xlu0 %v3467_v20, %s3098_s23 }
0x123f   :  { %1660 = vrot.lane.b32.xlu0 %v3467_v20, %s3099_s24 }
0x12a2   :  { %v1381_v63 = vpop.xlane.xlu0 %1380 }
0x12a3   :  { %2851 = vrcp.f32 %v1381_v63 }
0x12a6   :  { %v1384_v0 = vpop.xlane.xlu0 %1383 }
0x12a7   :  { %2853 = vrcp.f32 %v1384_v0 }
0x12aa   :  { %v1505_v2 = vpop.xlane.xlu0 %1504 }
0x12ab   :  { %2855 = vrcp.f32 %v1505_v2 }
0x12ae   :  { %v1508_v3 = vpop.xlane.xlu0 %1507 }
0x12af   :  { %2857 = vrcp.f32 %v1508_v3 }
0x12b0   :  { %v2852_v5 = vpop.eup %2851 }
0x12b1   :  { %v1387_v8 = vmul.f32 %v2852_v5, %v2844_v55 }
0x12b2   :  { %v1391_v6 = vpop.permute.xlu0 %1390 }
0x12b3   :  { %2658 = vmatpush3.bf16.msra.mxu0 %v1391_v6 }
0x12b4   :  { %v2854_v7 = vpop.eup %2853  ;;  %2669 = vmatprep.subr.bf16.mxu0 %v3093_v15 }
0x12b5   :  { %v1388_v9 = vmul.f32 %v2854_v7, %v2846_v57 }
0x12b6   :  { %v1661_v29 = vpop.permute.xlu0 %1660 }
0x12b7   :  { %v1389_v10 = vpack.c.bf16 %v1388_v9, %v1387_v8  ;;  %v1666_v35 = vsel %vm288_vm2, %v1661_v29, 0 }
0x12b8   :  { %v2856_v14 = vpop.eup %2855 }
0x12b9   :  { %2660 = vmatmul.mubr.msk.bf16.vlgmr.msra.gmra.mxu0 %vm336_vm3, %v1389_v10  ;;  %v1511_v41 = vmul.f32 %v2856_v14, %v2848_v59 }
0x12ba   :  { %2670 = vmatpush3.bf16.msra.mxu0 %v1515_v11  ;;  %2671 = vmatprep.mubr.msk.bf16.mxu0 %vm3094_vm1, %v3093_v15 }
0x12bb   :  { %2681 = vmatprep.subr.bf16.mxu0 %v3093_v15 }
0x12bc   :  { %v2858_v16 = vpop.eup %2857 }
0x12bd   :  { %v1512_v17 = vmul.f32 %v2858_v16, %v2850_v61 }
0x12bf   :  { %v1513_v1 = vpack.c.bf16 %v1512_v17, %v1511_v41  ;;  %v2429_v17 = vld [vmem:[%s3658_s6 + $0x18] sm:$0xf] }
0x12c1   :  { %2672 = vmatmul.mubr.msk.bf16.vlgmr.msra.gmra.mxu0 %vm336_vm3, %v1513_v1  ;;  %v1786_v1 = vsel %vm536_vm4, %v2429_v17, 0 }
0x12c2   :  { %2683 = vmatprep.mubr.msk.bf16.mxu0 %vm3094_vm1, %v3093_v15  ;;  %2682 = vmatpush3.bf16.msra.mxu0 %v1615_v18 }
0x12c3   :  { %2693 = vmatprep.subr.bf16.mxu0 %v3093_v15 }
0x1379   :  { %v1430_v22 = vpop.f32.mrf.mxu0 }
0x137b   :  { %v2661_v23 = vpop.f32.mrf.mxu0 }
0x137d   :  { %v1433_v24 = vpop.f32.mrf.mxu0 }
0x137e   :  { %v1437_v25 = vpack.c.bf16 %v1433_v24, %v1430_v22 }
0x137f   :  { %v2662_v26 = vpop.f32.mrf.mxu0 }
0x1380   :  { %2684 = vmatmul.mubr.msk.bf16.vlgmr.msra.gmra.mxu0 %vm288_vm2, %v1437_v25 }
0x1381   :  { %v1554_v27 = vpop.f32.mrf.mxu0  ;;  %2695 = vmatprep.mubr.msk.bf16.mxu0 %vm3094_vm1, %v3093_v15 }
0x1383   :  { %v2673_v28 = vpop.f32.mrf.mxu0 }
0x1385   :  { %v1557_v30 = vpop.f32.mrf.mxu0 }
0x1386   :  { %v1561_v33 = vpack.c.bf16 %v1557_v30, %v1554_v27 }
0x1387   :  { %v2674_v34 = vpop.f32.mrf.mxu0 }
0x1388   :  { %2678 = vmatmul.mubr.msk.bf16.vlgmr.msra.gmra.mxu1 %vm288_vm2, %v1561_v33 }
0x1389   :  { %2688 = vmatpush3.bf16.xpose.msra.mxu1 %v1666_v35  ;;  %2689 = vmatprep.mubr.msk.bf16.mxu1 %vm3094_vm1, %v3093_v15 }
0x138a   :  { %2699 = vmatprep.subr.bf16.mxu1 %v3093_v15 }
0x1390   :  { %2690 = vmatmul.mubr.msk.bf16.vlgmr.msra.gmra.mxu1 %vm288_vm2, %v1659_v36 }
0x1391   :  { %2701 = vmatprep.mubr.msk.bf16.mxu1 %vm3094_vm1, %v3093_v15  ;;  %2700 = vmatpush3.bf16.msra.mxu1 %v1786_v1 }
0x1392   :  { %2711 = vmatprep.subr.bf16.mxu1 %v3093_v15 }
0x1440   :  { %v1651_v37 = vpop.f32.mrf.mxu0 }
0x1442   :  { %v2685_v38 = vpop.f32.mrf.mxu0 }
0x1444   :  { %v1654_v39 = vpop.f32.mrf.mxu0 }
0x1446   :  { %v2686_v40 = vpop.f32.mrf.mxu0 }
0x1448   :  { %v1604_v42 = vpop.f32.mrf.mxu1 }
0x1449   :  { %v3535_v43 = vadd.f32 %v1651_v37, %v1604_v42 }
0x144a   :  { %v2679_v44 = vpop.f32.mrf.mxu1 }
0x144c   :  { %v1607_v31 = vpop.f32.mrf.mxu1 }
0x144d   :  { %v3537_v45 = vadd.f32 %v1654_v39, %v1607_v31 }
0x144e   :  { %v2680_v47 = vpop.f32.mrf.mxu1 }
0x1450   :  { %v1702_v46 = vpop.f32.mrf.mxu1 }
0x1451   :  { %v1703_v48 = vadd.f32 %v2887_v32, %v1702_v46 }
0x1452   :  { %v2691_v49 = vpop.f32.mrf.mxu1 }
0x1453   :  { %v1709_v51 = vsel %vm336_vm3, %v1703_v48, -inf }
0x1454   :  { %1710 = vmax.xlane.f32.xlu0 %v1709_v51  ;;  %v1705_v50 = vpop.f32.mrf.mxu1 }
0x1455   :  { %v1706_v53 = vadd.f32 %v2888_v52, %v1705_v50 }
0x1456   :  { %v2692_v54 = vpop.f32.mrf.mxu1 }
0x1457   :  { %v1712_v55 = vsel %vm336_vm3, %v1706_v53, -inf }
0x1458   :  { %1713 = vmax.xlane.f32.xlu1 %v1712_v55 }
0x1469   :  { %1833 = vrot.lane.b32.xlu1 %v3467_v20, %s3104_s3 }
0x146d   :  { %1831 = vrot.lane.b32.xlu1 %v3467_v20, %s3103_s20 }
0x14dd   :  { %v1711_v56 = vpop.xlane.xlu0 %1710 }
0x14de   :  { %v1715_v57 = vsub.f32 %v1703_v48, %v1711_v56 }
0x14e0   :  { %v1717_v58 = vmul.f32 1.442695, %v1715_v57 }
0x14e1   :  { %v1714_v59 = vpop.xlane.xlu1 %1713 }
0x14e2   :  { %2859 = vpow2.f32 %v1717_v58  ;;  %v1716_v60 = vsub.f32 %v1706_v53, %v1714_v59 }
0x14e4   :  { %v1719_v61 = vmul.f32 1.442695, %v1716_v60 }
0x14e5   :  { %v1834_v11 = vpop.permute.xlu1 %1833 }
0x14e6   :  { %2861 = vpow2.f32 %v1719_v61  ;;  %v1839_v16 = vsel %vm288_vm2, %v1834_v11, 0 }
0x14e9   :  { %v1832_v41 = vpop.permute.xlu1 %1831 }
0x14ef   :  { %v2860_v62 = vpop.eup %2859 }
0x14f0   :  { %v1721_v63 = vsel %vm336_vm3, %v2860_v62, 0.0 }
0x14f1   :  { %1722 = vadd.xlane.f32.xlu0 %v1721_v63 }
0x14f3   :  { %v2862_v0 = vpop.eup %2861 }
0x14f4   :  { %v1724_v2 = vsel %vm336_vm3, %v2862_v0, 0.0 }
0x14f5   :  { %1725 = vadd.xlane.f32.xlu0 %v1724_v2  ;;  %v2435_v2 = vld [vmem:[#allocation11 + $0x1] ss:$0 sm:$0xff] }
0x150b   :  { %1732 = vrot.lane.b32.xlu0 %v3467_v20, %s3102_s5 }
0x157a   :  { %v1723_v3 = vpop.xlane.xlu0 %1722 }
0x157b   :  { %2863 = vrcp.f32 %v1723_v3 }
0x157e   :  { %v1726_v5 = vpop.xlane.xlu0 %1725 }
0x157f   :  { %2865 = vrcp.f32 %v1726_v5 }
0x1582   :  { %v1733_v6 = vpop.permute.xlu0 %1732 }
0x1583   :  { %2694 = vmatpush3.bf16.msra.mxu0 %v1733_v6 }
0x1584   :  { %2705 = vmatprep.subr.bf16.mxu0 %v3093_v15 }
0x1588   :  { %v2864_v7 = vpop.eup %2863 }
0x1589   :  { %v1729_v9 = vmul.f32 %v2864_v7, %v2860_v62 }
0x158c   :  { %v2866_v8 = vpop.eup %2865 }
0x158d   :  { %v1730_v10 = vmul.f32 %v2866_v8, %v2862_v0 }
0x158f   :  { %v1731_v14 = vpack.c.bf16 %v1730_v10, %v1729_v9 }
0x1591   :  { %2696 = vmatmul.mubr.msk.bf16.vlgmr.msra.gmra.mxu0 %vm336_vm3, %v1731_v14 }
0x1592   :  { %2706 = vmatpush3.bf16.xpose.msra.mxu0 %v1839_v16  ;;  %2707 = vmatprep.mubr.msk.bf16.mxu0 %vm3094_vm1, %v3093_v15 }
0x1593   :  { %2717 = vmatprep.subr.bf16.mxu0 %v3093_v15 }
0x1599   :  { %2708 = vmatmul.mubr.msk.bf16.vlgmr.msra.gmra.mxu0 %vm288_vm2, %v1832_v41 }
0x159a   :  { %2719 = vmatprep.mubr.msk.bf16.mxu0 %vm3094_vm1, %v3093_v15 }
0x1651   :  { %v1772_v4 = vpop.f32.mrf.mxu0 }
0x1653   :  { %v2697_v18 = vpop.f32.mrf.mxu0 }
0x1655   :  { %v1775_v19 = vpop.f32.mrf.mxu0 }
0x1656   :  { %v1779_v21 = vpack.c.bf16 %v1775_v19, %v1772_v4 }
0x1657   :  { %v2698_v22 = vpop.f32.mrf.mxu0 }
0x1658   :  { %2702 = vmatmul.mubr.msk.bf16.vlgmr.msra.gmra.mxu1 %vm288_vm2, %v1779_v21  ;;  %v2787_v22 = vld [vmem:[%s3662_s10 + $0x18] sm:$0xff]  }
0x1659   :  { %v1875_v23 = vpop.f32.mrf.mxu0  ;;  %2713 = vmatprep.mubr.msk.bf16.mxu1 %vm3094_vm1, %v3093_v15 }
0x165a   :  { %v1876_v24 = vadd.f32 %v2887_v32, %v1875_v23  ;;  %v2788_v23 = vld [vmem:[%s3662_s10 + $0x10] sm:$0xff]  }
0x165b   :  { %v2709_v25 = vpop.f32.mrf.mxu0 }
0x165c   :  { %v1882_v26 = vsel %vm336_vm3, %v1876_v24, -inf }
0x165d   :  { %1883 = vmax.xlane.f32.xlu1 %v1882_v26  ;;  %v1878_v27 = vpop.f32.mrf.mxu0 }
0x165e   :  { %v1879_v28 = vadd.f32 %v2888_v52, %v1878_v27 }
0x165f   :  { %v2710_v29 = vpop.f32.mrf.mxu0 }
0x1660   :  { %v1885_v30 = vsel %vm336_vm3, %v1879_v28, -inf }
0x1661   :  { %1886 = vmax.xlane.f32.xlu0 %v1885_v30 }
0x166e   :  { %1905 = vrot.lane.b32.xlu1 %v3467_v20, %s3105_s28 }
0x16e6   :  { %v1884_v33 = vpop.xlane.xlu1 %1883 }
0x16e7   :  { %v1888_v34 = vsub.f32 %v1876_v24, %v1884_v33 }
0x16e9   :  { %v1890_v35 = vmul.f32 1.442695, %v1888_v34  ;;  %v2436_v34 = vld [vmem:[#allocation13 + $0x1] ss:$0 sm:$0xff] }
0x16ea   :  { %v1906_v36 = vpop.permute.xlu1 %1905  ;;  %v1887_v37 = vpop.xlane.xlu0 %1886 }
0x16eb   :  { %2867 = vpow2.f32 %v1890_v35  ;;  %v1889_v38 = vsub.f32 %v1879_v28, %v1887_v37  ;;  %2712 = vmatpush3.bf16.msra.mxu1 %v1906_v36 }
0x16ec   :  { %2723 = vmatprep.subr.bf16.mxu1 %v3093_v15 }
0x16ed   :  { %v1892_v39 = vmul.f32 1.442695, %v1889_v38  ;;  %v2437_v38 = vld [vmem:[#allocation14 + $0x1] ss:$0 sm:$0xff] }
0x16ef   :  { %2869 = vpow2.f32 %v1892_v39 }
0x16f8   :  { %v2868_v40 = vpop.eup %2867 }
0x16f9   :  { %v1894_v42 = vsel %vm336_vm3, %v2868_v40, 0.0 }
0x16fa   :  { %1895 = vadd.xlane.f32.xlu0 %v1894_v42 }
0x16fc   :  { %v2870_v44 = vpop.eup %2869 }
0x16fd   :  { %v1897_v31 = vsel %vm336_vm3, %v2870_v44, 0.0 }
0x16fe   :  { %1898 = vadd.xlane.f32.xlu0 %v1897_v31  ;;  %v2789_v31 = vld [vmem:[%s3664_s12 + $0x38] sm:$0xff]  }
0x1718   :  { %v1822_v20 = vpop.f32.mrf.mxu1 }
0x1719   :  { %v1829_v47 = vadd.f32 %v1822_v20, %v3535_v43  ;;  %v2433_v43 = vld [vmem:[%s3658_s6 + $0x1c] sm:$0xf]  ;;  %v2790_v20 = vld [vmem:[%s3664_s12 + $0x30] sm:$0xff]  }
0x171a   :  { %v2703_v46 = vpop.f32.mrf.mxu1 }
0x171b   :  { %v2792_v46 = vld [vmem:[%s3664_s12 + $0x20] sm:$0xff]  }
0x171c   :  { %v1825_v32 = vpop.f32.mrf.mxu1 }
0x171d   :  { %v1830_v48 = vadd.f32 %v1825_v32, %v3537_v45  ;;  %v1959_v45 = vsel %vm536_vm4, %v2433_v43, 0  ;;  %v2443_v32 = vld [vmem:[%s3663_s11 + $0x1] ss:$0 sm:$0xff] }
0x171e   :  { %v2704_v49 = vpop.f32.mrf.mxu1  ;;  %2718 = vmatpush3.bf16.msra.mxu0 %v1959_v45 }
0x171f   :  { %2731 = vmatprep.subr.bf16.mxu0 %v3093_v15 }
0x1783   :  { %v1896_v51 = vpop.xlane.xlu0 %1895 }
0x1784   :  { %2871 = vrcp.f32 %v1896_v51 }
0x1787   :  { %v1899_v50 = vpop.xlane.xlu0 %1898 }
0x1788   :  { %2873 = vrcp.f32 %v1899_v50 }
0x1791   :  { %v2872_v52 = vpop.eup %2871 }
0x1792   :  { %v1902_v54 = vmul.f32 %v2872_v52, %v2868_v40 }
0x1795   :  { %v2874_v53 = vpop.eup %2873 }
0x1796   :  { %v1903_v55 = vmul.f32 %v2874_v53, %v2870_v44 }
0x1798   :  { %v1904_v56 = vpack.c.bf16 %v1903_v55, %v1902_v54 }
0x179a   :  { %2714 = vmatmul.mubr.msk.bf16.vlgmr.msra.gmra.mxu1 %vm336_vm3, %v1904_v56 }
0x179b   :  { %2727 = vmatprep.mubr.msk.bf16.mxu1 %vm3094_vm1, %v3093_v15  ;;  %2724 = vmatpush3.bf16.msra.mxu1 %v2787_v22 }
0x179c   :  { %2725 = vmatprep.subr.bf16.mxu1 %v3093_v15 }
0x179f   :  { %2726 = vmatpush3.bf16.msra.mxu1 %v2788_v23 }
0x17a0   :  { %2743 = vmatprep.subr.bf16.mxu1 %v3093_v15 }
0x185a   :  { %v1945_v57 = vpop.f32.mrf.mxu1 }
0x185c   :  { %v2715_v58 = vpop.f32.mrf.mxu1 }
0x185e   :  { %v1948_v59 = vpop.f32.mrf.mxu1 }
0x185f   :  { %v1952_v60 = vpack.c.bf16 %v1948_v59, %v1945_v57 }
0x1860   :  { %v2716_v61 = vpop.f32.mrf.mxu1 }
0x1861   :  { %2720 = vmatmul.mubr.msk.bf16.vlgmr.msra.gmra.mxu0 %vm288_vm2, %v1952_v60 }
0x1862   :  { %2739 = vmatprep.mubr.msk.bf16.mxu0 %vm3094_vm1, %v3093_v15  ;;  %2732 = vmatpush3.bf16.msra.mxu0 %v2789_v31 }
0x1863   :  { %2733 = vmatprep.subr.bf16.mxu0 %v3093_v15 }
0x1866   :  { %2734 = vmatpush3.bf16.msra.mxu0 %v2790_v20 }
0x1867   :  { %2735 = vmatprep.subr.bf16.mxu0 %v3093_v15 }
0x1921   :  { %v1995_v62 = vpop.f32.mrf.mxu0 }
0x1922   :  { %v2002_v63 = vadd.f32 %v1995_v62, %v1829_v47  ;;  %v2791_v47 = vld [vmem:[%s3664_s12 + $0x28] sm:$0xff]  }
0x1923   :  { %v2721_v0 = vpop.f32.mrf.mxu0  ;;  %2736 = vmatpush3.bf16.msra.mxu0 %v2791_v47 }
0x1924   :  { %v2004_v3 = vadd.f32 %v2002_v63, %v3458_v12  ;;  %2737 = vmatprep.subr.bf16.mxu0 %v3093_v15 }
0x1925   :  { %v1998_v5 = vpop.f32.mrf.mxu0 }
0x1926   :  { %v2003_v6 = vadd.f32 %v1998_v5, %v1830_v48  ;;  %v2014_v7 = vadd.f32 %v2435_v2, %v2004_v3 }
0x1927   :  { %v2722_v8 = vpop.f32.mrf.mxu0  ;;  %2738 = vmatpush3.bf16.msra.mxu0 %v2792_v46 }
0x1928   :  { %v2005_v9 = vadd.f32 %v2003_v6, %v3460_v13  ;;  %v2020_v10 = vsel %vm170_vm0, %v2014_v7, 0.0 }
0x1929   :  { %2021 = vadd.xlane.f32.xlu0 %v2020_v10 }
0x192a   :  { %v2015_v11 = vadd.f32 %v2435_v2, %v2005_v9  ;;  %v2456_v9 = vld [vmem:[%s3665_s13 + $0x1] ss:$0 sm:$0xff] }
0x192c   :  { %v2023_v14 = vsel %vm170_vm0, %v2015_v11, 0.0 }
0x192d   :  { %2024 = vadd.xlane.f32.xlu0 %v2023_v14 }
0x19b2   :  { %v2022_v16 = vpop.xlane.xlu0 %2021 }
0x19b3   :  { %v2026_v41 = vmul.f32 0.03125, %v2022_v16 }
0x19b5   :  { %v2028_v17 = vsub.f32 %v2014_v7, %v2026_v41 }
0x19b6   :  { %v2025_v1 = vpop.xlane.xlu0 %2024 }
0x19b7   :  { %v2027_v4 = vmul.f32 0.03125, %v2025_v1  ;;  %v2030_v18 = vmul.f32 %v2028_v17, %v2028_v17 }
0x19b9   :  { %v2029_v12 = vsub.f32 %v2015_v11, %v2027_v4  ;;  %v2032_v19 = vsel %vm170_vm0, %v2030_v18, 0.0 }
0x19ba   :  { %2033 = vadd.xlane.f32.xlu0 %v2032_v19 }
0x19bb   :  { %v2031_v21 = vmul.f32 %v2029_v12, %v2029_v12 }
0x19bd   :  { %v2035_v13 = vsel %vm170_vm0, %v2031_v21, 0.0 }
0x19be   :  { %2036 = vadd.xlane.f32.xlu0 %v2035_v13 }
0x1a43   :  { %v2034_v24 = vpop.xlane.xlu0 %2033 }
0x1a44   :  { %v2038_v25 = vmul.f32 0.03125, %v2034_v24 }
0x1a46   :  { %v2040_v26 = vadd.f32 1e-12, %v2038_v25 }
0x1a47   :  { %v2037_v27 = vpop.xlane.xlu0 %2036 }
0x1a48   :  { %2875 = vrsqrt.f32 %v2040_v26  ;;  %v2039_v28 = vmul.f32 0.03125, %v2037_v27 }
0x1a4a   :  { %v2041_v29 = vadd.f32 1e-12, %v2039_v28 }
0x1a4c   :  { %2877 = vrsqrt.f32 %v2041_v29  ;;  %v2793_v29 = vld [vmem:[%s3668_s16 + $0x8] sm:$0xff]  }
0x1a55   :  { %v2876_v30 = vpop.eup %2875 }
0x1a56   :  { %v2044_v33 = vmul.f32 %v2876_v30, %v2028_v17  ;;  %v2794_v30 = vld [vmem:[%s3668_s16] sm:$0xff]  }
0x1a58   :  { %v2052_v37 = vmul.f32 %v2436_v34, %v2044_v33 }
0x1a59   :  { %v2878_v35 = vpop.eup %2877 }
0x1a5a   :  { %v2045_v36 = vmul.f32 %v2878_v35, %v2029_v12  ;;  %v2060_v40 = vadd.f32 %v2437_v38, %v2052_v37 }
0x1a5c   :  { %v2053_v39 = vmul.f32 %v2436_v34, %v2045_v36 }
0x1a5e   :  { %v2061_v42 = vadd.f32 %v2437_v38, %v2053_v39 }
0x1a60   :  { %v2062_v44 = vpack.c.bf16 %v2061_v42, %v2060_v40 }
0x1a62   :  { %2728 = vmatmul.mubr.msk.bf16.vlgmr.msra.gmra.mxu1 %vm170_vm0, %v2062_v44 }
0x1a63   :  { %2747 = vmatprep.mubr.msk.bf16.mxu1 %vm3094_vm1, %v3093_v15  ;;  %2744 = vmatpush3.bf16.msra.mxu1 %v2793_v29 }
0x1a64   :  { %2745 = vmatprep.subr.bf16.mxu1 %v3093_v15  ;;  %v2465_v15 = vld [vmem:[%s3667_s15 + $0x1] ss:$0 sm:$0xff] }
0x1a67   :  { %2746 = vmatpush3.bf16.msra.mxu1 %v2794_v30 }
0x1b22   :  { %v2125_v48 = vpop.f32.mrf.mxu1 }
0x1b23   :  { %v2126_v49 = vadd.f32 %v2443_v32, %v2125_v48 }
0x1b24   :  { %v2729_v51 = vpop.f32.mrf.mxu1 }
0x1b25   :  { %v2134_v50 = vmul.f32 %v2126_v49, %v2126_v49  ;;  %v2132_v2 = vmul.f32 0.5, %v2126_v49 }
0x1b26   :  { %v2128_v52 = vpop.f32.mrf.mxu1 }
0x1b27   :  { %v2136_v53 = vmul.f32 %v2134_v50, %v2126_v49  ;;  %v2129_v54 = vadd.f32 %v2443_v32, %v2128_v52 }
0x1b28   :  { %v2730_v55 = vpop.f32.mrf.mxu1 }
0x1b29   :  { %v2138_v56 = vmul.f32 0.044715, %v2136_v53  ;;  %v2135_v43 = vmul.f32 %v2129_v54, %v2129_v54  ;;  %v2133_v3 = vmul.f32 0.5, %v2129_v54 }
0x1b2b   :  { %v2140_v45 = vadd.f32 %v2138_v56, %v2126_v49  ;;  %v2137_v57 = vmul.f32 %v2135_v43, %v2129_v54  ;;  %v2466_v49 = vld [vmem:[%s3669_s17] ss:$0 sm:$0xff] }
0x1b2d   :  { %v2142_v58 = vmul.f32 0.7978846, %v2140_v45  ;;  %v2139_v59 = vmul.f32 0.044715, %v2137_v57 }
0x1b2f   :  { %2879 = vtanh.f32 %v2142_v58  ;;  %v2141_v60 = vadd.f32 %v2139_v59, %v2129_v54 }
0x1b31   :  { %v2143_v61 = vmul.f32 0.7978846, %v2141_v60 }
0x1b33   :  { %2881 = vtanh.f32 %v2143_v61 }
0x1b3c   :  { %v2880_v62 = vpop.eup %2879 }
0x1b3d   :  { %v2146_v63 = vadd.f32 1.0, %v2880_v62 }
0x1b3f   :  { %v2148_v6 = vmul.f32 %v2146_v63, %v2132_v2 }
0x1b40   :  { %v2882_v0 = vpop.eup %2881 }
0x1b41   :  { %v2147_v5 = vadd.f32 1.0, %v2882_v0 }
0x1b43   :  { %v2149_v7 = vmul.f32 %v2147_v5, %v2133_v3 }
0x1b45   :  { %v2150_v8 = vpack.c.bf16 %v2149_v7, %v2148_v6 }
0x1b47   :  { %2740 = vmatmul.mubr.msk.bf16.vlgmr.msra.gmra.mxu0 %vm1155_vm5, %v2150_v8 }
0x1c07   :  { %v2229_v10 = vpop.f32.mrf.mxu0 }
0x1c08   :  { %v2230_v11 = vadd.f32 %v2456_v9, %v2229_v10 }
0x1c09   :  { %v2741_v14 = vpop.f32.mrf.mxu0 }
0x1c0a   :  { %v2236_v16 = vadd.f32 %v2230_v11, %v2060_v40 }
0x1c0b   :  { %v2232_v41 = vpop.f32.mrf.mxu0 }
0x1c0c   :  { %v2233_v17 = vadd.f32 %v2456_v9, %v2232_v41  ;;  %v2242_v1 = vsel %vm170_vm0, %v2236_v16, 0.0 }
0x1c0d   :  { %2243 = vadd.xlane.f32.xlu1 %v2242_v1  ;;  %v2742_v4 = vpop.f32.mrf.mxu0 }
0x1c0e   :  { %v2237_v18 = vadd.f32 %v2233_v17, %v2061_v42  ;;  %v2464_v42 = vld [vmem:[%s3666_s14 + $0x1] ss:$0 sm:$0xff]  ;;  %s3106_s14 = smov [#allocation16]  }
0x1c0f   :  { %s2359_s20 = sshll.u32 %s3106_s14, 4  ;;  %s2360_s20 = int_to_ptr.vmem [resolvable:$true] %s2359_s20 }
0x1c10   :  { %v2245_v12 = vsel %vm170_vm0, %v2237_v18, 0.0  ;;  %s3049_s15 = scalar_lea.vmem %s2360_s20, 256  ;;  %p3054_p13 = scmp.lt.s32.totalorder %s2360_s20, %s2360_s20 }
0x1c11   :  { %2246 = vadd.xlane.f32.xlu0 %v2245_v12  ;;  %p3050_p12 = scmp.ne.s32.totalorder %s2360_s20, %s3049_s15  ;;  %p3055_p0 = scmp.lt.s32.totalorder %s3049_s15, %s3049_s15 }
0x1c13   :  { %p3056_p1 = por %p3055_p0, %p3054_p13 }
0x1c15   :  { %p3057_p2 = pnand %p3056_p1, %p3050_p12 }
0x1c96   :  { %v2244_v19 = vpop.xlane.xlu1 %2243 }
0x1c97   :  { %v2248_v21 = vmul.f32 0.03125, %v2244_v19 }
0x1c99   :  { %v2250_v13 = vsub.f32 %v2236_v16, %v2248_v21 }
0x1c9a   :  { %v2247_v22 = vpop.xlane.xlu0 %2246 }
0x1c9b   :  { %v2249_v23 = vmul.f32 0.03125, %v2247_v22  ;;  %v2252_v24 = vmul.f32 %v2250_v13, %v2250_v13 }
0x1c9d   :  { %v2251_v25 = vsub.f32 %v2237_v18, %v2249_v23  ;;  %v2254_v26 = vsel %vm170_vm0, %v2252_v24, 0.0 }
0x1c9e   :  { %2255 = vadd.xlane.f32.xlu0 %v2254_v26 }
0x1c9f   :  { %v2253_v27 = vmul.f32 %v2251_v25, %v2251_v25 }
0x1ca1   :  { %v2257_v28 = vsel %vm170_vm0, %v2253_v27, 0.0 }
0x1ca2   :  { %2258 = vadd.xlane.f32.xlu0 %v2257_v28 }
0x1d27   :  { %v2256_v33 = vpop.xlane.xlu0 %2255 }
0x1d28   :  { %v2260_v34 = vmul.f32 0.03125, %v2256_v33 }
0x1d2a   :  { %v2262_v35 = vadd.f32 1e-12, %v2260_v34 }
0x1d2b   :  { %v2259_v36 = vpop.xlane.xlu0 %2258 }
0x1d2c   :  { %2883 = vrsqrt.f32 %v2262_v35  ;;  %v2261_v37 = vmul.f32 0.03125, %v2259_v36 }
0x1d2e   :  { %v2263_v38 = vadd.f32 1e-12, %v2261_v37 }
0x1d30   :  { %2885 = vrsqrt.f32 %v2263_v38 }
0x1d39   :  { %v2884_v39 = vpop.eup %2883 }
0x1d3a   :  { %v2266_v40 = vmul.f32 %v2884_v39, %v2250_v13 }
0x1d3c   :  { %v2274_v20 = vmul.f32 %v2464_v42, %v2266_v40 }
0x1d3d   :  { %v2886_v44 = vpop.eup %2885 }
0x1d3e   :  { %v2267_v31 = vmul.f32 %v2886_v44, %v2251_v25  ;;  %v2282_v46 = vadd.f32 %v2465_v15, %v2274_v20 }
0x1d40   :  { %v2275_v47 = vmul.f32 %v2464_v42, %v2267_v31 }
0x1d42   :  { %v2283_v32 = vadd.f32 %v2465_v15, %v2275_v47 }
0x1d44   :  { %v2284_v48 = vpack.c.bf16 %v2283_v32, %v2282_v46 }
0x1d46   :  { %2748 = vmatmul.mubr.msk.bf16.vlgmr.msra.gmra.mxu1 %vm170_vm0, %v2284_v48 }
0x1e06   :  { %v2345_v51 = vpop.f32.mrf.mxu1 }
0x1e07   :  { %v2346_v50 = vadd.f32 %v2466_v49, %v2345_v51 }
0x1e08   :  { %v2749_v52 = vpop.f32.mrf.mxu1 }
0x1e09   :  { %2352 = vst [vmem:[#allocation16] sm:$0xff] %v2346_v50 }
0x1e0a   :  { %v2348_v53 = vpop.f32.mrf.mxu1 }
0x1e0b   :  { %v2349_v54 = vadd.f32 %v2466_v49, %v2348_v53 }
0x1e0c   :  { %v2750_v55 = vpop.f32.mrf.mxu1 }
0x1e0d   :  { %2353 = vst [vmem:[#allocation16 + $0x8] sm:$0xff] %v2349_v54 }
0x1e0e   :  { %3060 = shalt.err (!%p3057_p2)
}
0x1e0f   :  { %2365 = dma.vmem_to_hbm [thread:$0]  %s2360_s20, 256, %s3670_s18, [#allocation4], %s3083_s19, %s3083_s19, %s3084_s1  }
0x1e10   :  { %3079 = dma.done.wait [#allocation4], 256  }
0x1e11   :  { %3080 = vsyncadd [#allocation4], 4294967040 }
0x1e12   :  { %2369 = vsyncpa [#allocation3], 1 }
0x1e13   :  { %2370 = vsyncpa [#allocation6], 1 }
0x1e14   :  { %2371 = vsyncpa [#allocation9], 1 }
0x1e15   :  { %2372 = vsyncpa [#allocation12], 1 }
0x1e16   :  { %2373 = vsyncpa [#allocation15], 1 }
0x1e17   :  { %2374 = vsyncpa [#allocation4], 1 }

</bundles_post_ra>
